<compile_context>
chip_gen: v7x
topology: tpu7x:2x2x1
jax: 0.10.0
libtpu: 0.0.40
codegen_flags: <defaults>
</compile_context>

<pallas_src>
import random

import jax
import jax.numpy as jnp
from jax.experimental import pallas as pl
from jax.experimental.pallas import tpu as pltpu

WEIGHT_DTYPE = jnp.bfloat16   # MXU operand dtype; accumulation stays float32
LANE = 128
SUBLANE = 8


def _round_up(x, m):
    return (x + m - 1) // m * m


# --------------------------- lane-dense projection --------------------------- #

def _matmul_bias_kernel(x_ref, w_ref, b_ref, y_ref):
    x = x_ref[...].astype(w_ref.dtype)
    y_ref[...] = (jnp.dot(x, w_ref[...], preferred_element_type=jnp.float32)
                  + b_ref[...])


def matmul_bias(x, w, b):
    """y = x @ w + b. Shapes here are tiny, so everything stays VMEM-resident.
    # TODO(synk): tile over M (grid + BlockSpec) for large S*B / vocab sizes.
    """
    M, _ = x.shape
    N = w.shape[1]
    vmem = lambda: pl.BlockSpec(memory_space=pltpu.MemorySpace.VMEM)
    return pl.pallas_call(
        _matmul_bias_kernel,
        out_shape=jax.ShapeDtypeStruct((M, N), jnp.float32),
        in_specs=[vmem(), vmem(), vmem()],
        out_specs=vmem(),
    )(x, w, b)


# ------------------------------ encoder kernel ------------------------------ #

def _encoder_gru_kernel(xp_ref, w_hh_ref, b_hh_ref, enc_out_ref, h_last_ref, h_scr):
    """One GRU step per grid iteration. x-path gates are precomputed (xp)."""
    t = pl.program_id(0)
    H = h_scr.shape[-1]

    @pl.when(t == 0)
    def _():
        h_scr[...] = jnp.zeros_like(h_scr)

    gx = xp_ref[0]                                    # [B, 3H] (already has b_ih)
    h = h_scr[...]                                    # [B, H]
    gh = (jnp.dot(h.astype(w_hh_ref.dtype), w_hh_ref[...],
                  preferred_element_type=jnp.float32) + b_hh_ref[...])   # [B, 3H]

    r = jax.nn.sigmoid(gx[:, :H] + gh[:, :H])
    z = jax.nn.sigmoid(gx[:, H:2 * H] + gh[:, H:2 * H])
    n = jnp.tanh(gx[:, 2 * H:] + r * gh[:, 2 * H:])
    h_new = (1.0 - z) * n + z * h

    h_scr[...] = h_new
    enc_out_ref[0] = h_new          # [B, H] into the (1, B, H) block
    h_last_ref[...] = h_new         # constant block -> final value survives


def encoder_recurrence(xp, w_hh, b_hh):
    S, Bp, G = xp.shape
    Hp = G // 3
    return pl.pallas_call(
        _encoder_gru_kernel,
        out_shape=(jax.ShapeDtypeStruct((S, Bp, Hp), jnp.float32),
                   jax.ShapeDtypeStruct((Bp, Hp), jnp.float32)),
        grid_spec=pltpu.PrefetchScalarGridSpec(
            num_scalar_prefetch=0,
            grid=(S,),
            in_specs=[
                pl.BlockSpec((1, Bp, G), lambda t: (t, 0, 0)),
                pl.BlockSpec((Hp, G), lambda t: (0, 0)),
                pl.BlockSpec((1, G), lambda t: (0, 0)),
            ],
            out_specs=(
                pl.BlockSpec((1, Bp, Hp), lambda t: (t, 0, 0)),
                pl.BlockSpec((Bp, Hp), lambda t: (0, 0)),
            ),
            scratch_shapes=[pltpu.VMEM((Bp, Hp), jnp.float32)],
        ),
        compiler_params=pltpu.CompilerParams(dimension_semantics=("arbitrary",)),
    )(xp, w_hh, b_hh)


# -------------------------- fused decoder time loop -------------------------- #

def _decoder_fused_kernel(sel_ref, teach_ref, h0_ref, enc_ref, keys_ref,
                          att_wh_ref, att_v_ref, w_ic_ref, w_hh_ref,
                          b_i_ref, b_h_ref, w_out_ref, b_out_ref,
                          out_ref, h_scr, prev_scr):
    """One decoder step per grid iteration: attention -> GRU cell -> out proj."""
    t = pl.program_id(0)
    H = h_scr.shape[-1]
    wdt = w_ic_ref.dtype

    @pl.when(t == 0)
    def _():
        h_scr[...] = h0_ref[...]
        prev_scr[...] = jnp.zeros_like(prev_scr)

    # Decoder input: zeros at t==0 (sel[0]==1 and teach[0]==0), else
    # teacher-forced trg[:, t-1, :] or the previous step's output.
    f = (sel_ref[t] > 0).astype(jnp.float32)
    inp = f * teach_ref[0] + (1.0 - f) * prev_scr[...]               # [B, V]
    h = h_scr[...]                                                   # [B, H]

    # --- additive attention (keys = enc @ W_e precomputed outside the loop) ---
    q = jnp.dot(h.astype(wdt), att_wh_ref[...],
                preferred_element_type=jnp.float32)                  # [B, H]
    e = jnp.tanh(keys_ref[...] + q[None])                            # [S, B, H]
    s = jnp.sum(e * att_v_ref[...][None], axis=-1, keepdims=True)    # [S, B, 1]
    m = jnp.max(s, axis=0, keepdims=True)
    w = jnp.exp(s - m)
    attn = w / jnp.sum(w, axis=0, keepdims=True)                     # [S, B, 1]
    context = jnp.sum(attn * enc_ref[...], axis=0)                   # [B, H]

    # --- GRU cell on concat(input, context); gates fused into one [*,3H] matmul ---
    ic = jnp.concatenate([inp, context], axis=-1).astype(wdt)        # [B, V+H]
    gx = (jnp.dot(ic, w_ic_ref[...], preferred_element_type=jnp.float32)
          + b_i_ref[...])                                            # [B, 3H]
    gh = (jnp.dot(h.astype(wdt), w_hh_ref[...],
                  preferred_element_type=jnp.float32) + b_h_ref[...])  # [B, 3H]
    r = jax.nn.sigmoid(gx[:, :H] + gh[:, :H])
    z = jax.nn.sigmoid(gx[:, H:2 * H] + gh[:, H:2 * H])
    n = jnp.tanh(gx[:, 2 * H:] + r * gh[:, 2 * H:])
    h_new = (1.0 - z) * n + z * h                                    # [B, H]

    # --- output projection on concat(h_new, context, input), single matmul ---
    hcx = jnp.concatenate([h_new, context, inp], axis=-1).astype(wdt)  # [B, 2H+V]
    out = (jnp.dot(hcx, w_out_ref[...], preferred_element_type=jnp.float32)
           + b_out_ref[...])                                           # [B, V]

    out_ref[0] = out
    h_scr[...] = h_new
    prev_scr[...] = out


def decoder_fused(tf_sel, teach, h0, enc, keys, p):
    Tm1, Bp, Vp = teach.shape
    S = enc.shape[0]
    Hp = h0.shape[1]
    G = 3 * Hp
    grid_spec = pltpu.PrefetchScalarGridSpec(
        num_scalar_prefetch=1,
        grid=(Tm1,),
        in_specs=[
            pl.BlockSpec((1, Bp, Vp), lambda t, sel: (t, 0, 0)),      # teacher inputs
            pl.BlockSpec((Bp, Hp), lambda t, sel: (0, 0)),            # h0
            pl.BlockSpec((S, Bp, Hp), lambda t, sel: (0, 0, 0)),      # encoder outputs
            pl.BlockSpec((S, Bp, Hp), lambda t, sel: (0, 0, 0)),      # attention keys
            pl.BlockSpec((Hp, Hp), lambda t, sel: (0, 0)),            # att_wh
            pl.BlockSpec((1, Hp), lambda t, sel: (0, 0)),             # att_v (row)
            pl.BlockSpec((Vp + Hp, G), lambda t, sel: (0, 0)),        # w_ic  (fused gates)
            pl.BlockSpec((Hp, G), lambda t, sel: (0, 0)),             # w_hh  (fused gates)
            pl.BlockSpec((1, G), lambda t, sel: (0, 0)),              # b_i
            pl.BlockSpec((1, G), lambda t, sel: (0, 0)),              # b_h
            pl.BlockSpec((2 * Hp + Vp, Vp), lambda t, sel: (0, 0)),   # w_out (fused)
            pl.BlockSpec((1, Vp), lambda t, sel: (0, 0)),             # b_out
        ],
        out_specs=pl.BlockSpec((1, Bp, Vp), lambda t, sel: (t, 0, 0)),
        scratch_shapes=[pltpu.VMEM((Bp, Hp), jnp.float32),   # hidden carry
                        pltpu.VMEM((Bp, Vp), jnp.float32)],  # previous output carry
    )
    return pl.pallas_call(
        _decoder_fused_kernel,
        out_shape=jax.ShapeDtypeStruct((Tm1, Bp, Vp), jnp.float32),
        grid_spec=grid_spec,
        compiler_params=pltpu.CompilerParams(dimension_semantics=("arbitrary",)),
    )(tf_sel, teach, h0, enc, keys,
      p["att_wh"], p["att_v"], p["w_ic"], p["w_hh"],
      p["b_i"], p["b_h"], p["w_out"], p["b_out"])


# ------------------------------ parameter prep ------------------------------ #

def init_params(key, D, H, V):
    """Logical (unpadded) parameters, mirroring the PyTorch module layout."""
    def nrm(k, shape, scale=0.1):
        return (jax.random.normal(k, shape) * scale).astype(jnp.float32)
    names_shapes = [
        ("enc_w_ih", (3, D, H)), ("enc_w_hh", (3, H, H)),
        ("enc_b_ih", (3, H)), ("enc_b_hh", (3, H)),
        ("att_wh", (H, H)), ("att_we", (H, H)), ("att_v", (H,)),
        ("dec_wx", (3, V, H)), ("dec_wc", (3, H, H)), ("dec_whh", (3, H, H)),
        ("dec_b_i", (3, H)), ("dec_b_h", (3, H)),
        ("out_wh", (H, V)), ("out_wc", (H, V)), ("out_wx", (V, V)), ("out_b", (V,)),
    ]
    keys = jax.random.split(key, len(names_shapes))
    return {name: nrm(k, shape) for (name, shape), k in zip(names_shapes, keys)}


def _pad2(x, r, c):
    return jnp.pad(x, ((0, r - x.shape[0]), (0, c - x.shape[1])))


def _pad1(x, n):
    return jnp.pad(x, (0, n - x.shape[0]))


def pack_params(p):
    """Zero-pad to lane-dense sizes, fuse the 3 GRU gates along the output dim,
    fuse the decoder input/context and output-projection weights, and cast
    matmul weights to WEIGHT_DTYPE (biases stay float32)."""
    D, H = p["enc_w_ih"].shape[1], p["enc_w_ih"].shape[2]
    V = p["dec_wx"].shape[1]
    Dp, Hp, Vp = _round_up(D, LANE), _round_up(H, LANE), _round_up(V, LANE)

    def fuse(ws):   # list of 3 padded [K, Hp] gate blocks -> [K, 3*Hp]
        return jnp.concatenate(ws, axis=1)

    packed = {
        "enc_w_ih": fuse([_pad2(p["enc_w_ih"][g], Dp, Hp) for g in range(3)]),
        "enc_w_hh": fuse([_pad2(p["enc_w_hh"][g], Hp, Hp) for g in range(3)]),
        "enc_b_ih": jnp.concatenate([_pad1(p["enc_b_ih"][g], Hp) for g in range(3)])[None, :],
        "enc_b_hh": jnp.concatenate([_pad1(p["enc_b_hh"][g], Hp) for g in range(3)])[None, :],
        "att_wh": _pad2(p["att_wh"], Hp, Hp),
        "att_we": _pad2(p["att_we"], Hp, Hp),
        "att_v": _pad1(p["att_v"], Hp)[None, :],
        "w_ic": fuse([jnp.concatenate([_pad2(p["dec_wx"][g], Vp, Hp),
                                       _pad2(p["dec_wc"][g], Hp, Hp)], axis=0)
                      for g in range(3)]),
        "w_hh": fuse([_pad2(p["dec_whh"][g], Hp, Hp) for g in range(3)]),
        "b_i": jnp.concatenate([_pad1(p["dec_b_i"][g], Hp) for g in range(3)])[None, :],
        "b_h": jnp.concatenate([_pad1(p["dec_b_h"][g], Hp) for g in range(3)])[None, :],
        "w_out": jnp.concatenate([_pad2(p["out_wh"], Hp, Vp),
                                  _pad2(p["out_wc"], Hp, Vp),
                                  _pad2(p["out_wx"], Vp, Vp)], axis=0),
        "b_out": _pad1(p["out_b"], Vp)[None, :],
    }
    for k in ("enc_w_ih", "enc_w_hh", "att_wh", "att_we", "w_ic", "w_hh", "w_out"):
        packed[k] = packed[k].astype(WEIGHT_DTYPE)
    return packed


# ------------------------------ Seq2Seq forward ------------------------------ #

@jax.jit
def _seq2seq_compute(src, trg, tf_sel, packed):
    B, S, D = src.shape
    _, T, V = trg.shape
    Dp = packed["enc_w_ih"].shape[0]
    Hp = packed["att_wh"].shape[0]
    Vp = packed["b_out"].shape[1]
    Bp = _round_up(B, SUBLANE)

    # ---- encoder ----
    src_p = jnp.pad(src, ((0, Bp - B), (0, 0), (0, Dp - D)))
    src_sb = jnp.transpose(src_p, (1, 0, 2))                         # [S, Bp, Dp]
    # input projection hoisted off the recurrent critical path (one big matmul)
    xp = matmul_bias(src_sb.reshape(S * Bp, Dp),
                     packed["enc_w_ih"], packed["enc_b_ih"]).reshape(S, Bp, 3 * Hp)
    enc_out, h_last = encoder_recurrence(xp, packed["enc_w_hh"], packed["enc_b_hh"])

    # attention keys hoisted out of the decoder loop (computed once)
    keys = matmul_bias(enc_out.reshape(S * Bp, Hp), packed["att_we"],
                       jnp.zeros((1, Hp), jnp.float32)).reshape(S, Bp, Hp)

    # ---- decoder: whole time loop fused into one kernel ----
    trg_p = jnp.pad(trg, ((0, Bp - B), (0, 0), (0, Vp - V)))
    # teach[0] = zeros (initial input), teach[t] = trg[:, t-1, :] for t >= 1
    teach = jnp.concatenate(
        [jnp.zeros((1, Bp, Vp), jnp.float32),
         jnp.transpose(trg_p[:, :T - 2, :], (1, 0, 2))], axis=0)     # [T-1, Bp, Vp]

    outs = decoder_fused(tf_sel, teach, h_last, enc_out, keys, packed)  # [T-1, Bp, Vp]
    outputs = jnp.concatenate(
        [outs, jnp.zeros((1, Bp, Vp), jnp.float32)], axis=0)         # outputs[T-1] stays 0
    return outputs[:, :B, :V]                                        # [T, B, V]


def seq2seq_forward(src, trg, params, teacher_forcing_ratio=0.5):
    """Mirrors PyTorch Seq2Seq.forward (teacher forcing via Python `random`,
    outputs[-1] left as zeros). The per-step coin flips are drawn up front with
    the same random.random() mechanism and passed to the fused decoder kernel
    as a prefetched int32 selector."""
    T = trg.shape[1]
    draws = [random.random() < teacher_forcing_ratio for _ in range(T - 1)]
    # step 0 always consumes the all-zeros initial input (slot 0 of `teach`);
    # step t >= 1 consumes trg[:, t-1, :] iff the draw at step t-1 said so.
    tf_sel = jnp.array([1] + [int(draws[t - 1]) for t in range(1, T - 1)],
                       dtype=jnp.int32)
    packed = pack_params(params)
    return _seq2seq_compute(src, trg, tf_sel, packed)


# ----------------------------------- main ----------------------------------- #

if __name__ == "__main__":
    B, S, D, T, V, H = 2, 8, 4, 6, 8, 32

    key = jax.random.PRNGKey(0)
    k_src, k_trg, k_par = jax.random.split(key, 3)
    src = jax.random.normal(k_src, (B, S, D), dtype=jnp.float32)
    trg = jax.random.normal(k_trg, (B, T, V), dtype=jnp.float32)
    params = init_params(k_par, D, H, V)

    random.seed(0)  # deterministic teacher forcing, same mechanism as the PyTorch code
    out = seq2seq_forward(src, trg, params, teacher_forcing_ratio=0.5)
    out = jax.block_until_ready(out)

    assert out.shape == (T, B, V)
    assert bool(jnp.all(jnp.isfinite(out)))
    print("KERNEL_OK")
</pallas_src>

<mosaic_0001>
module attributes {stable_mosaic.version = 11 : i64} {
  func.func @_encoder_gru_kernel(%arg0: i32, %arg1: memref<1x8x384xf32, #tpu.memory_space<vmem>>, %arg2: memref<128x384xbf16, #tpu.memory_space<vmem>>, %arg3: memref<1x384xf32, #tpu.memory_space<vmem>>, %arg4: memref<1x8x128xf32, #tpu.memory_space<vmem>>, %arg5: memref<8x128xf32, #tpu.memory_space<vmem>>, %arg6: memref<8x128xf32, #tpu.memory_space<vmem>>) attributes {dimension_semantics = [#tpu.dimension_semantics<arbitrary>], iteration_bounds = array<i64: 8>, scalar_prefetch = 0 : i64, scratch_operands = 1 : i64, tpu.core_type = #tpu.core_type<tc>, window_params = [{transform_indices = @transform_0, window_bounds = array<i64: 1, 8, 384>}, {pipeline_mode = #tpu.pipeline_mode<synchronous>, transform_indices = @transform_1, window_bounds = array<i64: 128, 384>}, {pipeline_mode = #tpu.pipeline_mode<synchronous>, transform_indices = @transform_2, window_bounds = array<i64: 1, 384>}, {transform_indices = @transform_3, window_bounds = array<i64: 1, 8, 128>}, {pipeline_mode = #tpu.pipeline_mode<synchronous>, transform_indices = @transform_4, window_bounds = array<i64: 8, 128>}]} {
    %c0_i32 = arith.constant 0 : i32
    %0 = arith.cmpi eq, %arg0, %c0_i32 : i32
    %1 = arith.extui %0 : i1 to i32
    %c0_i32_0 = arith.constant 0 : i32
    %2 = arith.cmpi ne, %1, %c0_i32_0 : i32
    scf.if %2 {
      %cst_19 = arith.constant 0.000000e+00 : f32
      %43 = vector.broadcast %cst_19 : f32 to vector<8x128xf32>
      %c0_20 = arith.constant 0 : index
      %c0_21 = arith.constant 0 : index
      %44 = vector.load %arg6[%c0_20, %c0_21] : memref<8x128xf32, #tpu.memory_space<vmem>>, vector<8x128xf32>
      tpu.vector_store %arg6[%c0_20, %c0_21], %43 {strides = array<i32>} : memref<8x128xf32, #tpu.memory_space<vmem>>, vector<8x128xf32>,
    } else {
    }
    %c0 = arith.constant 0 : index
    %c0_1 = arith.constant 0 : index
    %c0_2 = arith.constant 0 : index
    %3 = vector.load %arg1[%c0, %c0_1, %c0_2] : memref<1x8x384xf32, #tpu.memory_space<vmem>>, vector<1x8x384xf32>
    %4 = vector.shape_cast %3 : vector<1x8x384xf32> to vector<8x384xf32>
    %c0_3 = arith.constant 0 : index
    %c0_4 = arith.constant 0 : index
    %5 = vector.load %arg6[%c0_3, %c0_4] : memref<8x128xf32, #tpu.memory_space<vmem>>, vector<8x128xf32>
    %6 = arith.truncf %5 : vector<8x128xf32> to vector<8x128xbf16>
    %c0_5 = arith.constant 0 : index
    %c0_6 = arith.constant 0 : index
    %7 = vector.load %arg2[%c0_5, %c0_6] : memref<128x384xbf16, #tpu.memory_space<vmem>>, vector<128x384xbf16>
    %cst = arith.constant dense<0.000000e+00> : vector<8x384xf32>
    %8 = tpu.matmul %6, %7, %cst {dimension_numbers = #tpu.dot_dimension_numbers<[1], [0], [0], [1], [0, 0, 1, 1], [], []>} : vector<8x128xbf16>, vector<128x384xbf16>, vector<8x384xf32> -> vector<8x384xf32>
    %c0_7 = arith.constant 0 : index
    %c0_8 = arith.constant 0 : index
    %9 = vector.load %arg3[%c0_7, %c0_8] : memref<1x384xf32, #tpu.memory_space<vmem>>, vector<1x384xf32>
    %10 = vector.broadcast %9 : vector<1x384xf32> to vector<8x384xf32>
    %11 = arith.addf %8, %10 : vector<8x384xf32>
    %12 = vector.extract_strided_slice %4 {offsets = [0, 0], sizes = [8, 128], strides = [1, 1]} : vector<8x384xf32> to vector<8x128xf32>
    %13 = vector.extract_strided_slice %11 {offsets = [0, 0], sizes = [8, 128], strides = [1, 1]} : vector<8x384xf32> to vector<8x128xf32>
    %14 = arith.addf %12, %13 : vector<8x128xf32>
    %15 = arith.negf %14 : vector<8x128xf32>
    %16 = math.exp %15 : vector<8x128xf32>
    %cst_9 = arith.constant 1.000000e+00 : f32
    %17 = vector.broadcast %cst_9 : f32 to vector<8x128xf32>
    %18 = arith.addf %17, %16 : vector<8x128xf32>
    %19 = arith.divf %17, %18 : vector<8x128xf32>
    %20 = vector.extract_strided_slice %4 {offsets = [0, 128], sizes = [8, 128], strides = [1, 1]} : vector<8x384xf32> to vector<8x128xf32>
    %21 = vector.extract_strided_slice %11 {offsets = [0, 128], sizes = [8, 128], strides = [1, 1]} : vector<8x384xf32> to vector<8x128xf32>
    %22 = arith.addf %20, %21 : vector<8x128xf32>
    %23 = arith.negf %22 : vector<8x128xf32>
    %24 = math.exp %23 : vector<8x128xf32>
    %cst_10 = arith.constant 1.000000e+00 : f32
    %25 = vector.broadcast %cst_10 : f32 to vector<8x128xf32>
    %26 = arith.addf %25, %24 : vector<8x128xf32>
    %27 = arith.divf %25, %26 : vector<8x128xf32>
    %28 = vector.extract_strided_slice %4 {offsets = [0, 256], sizes = [8, 128], strides = [1, 1]} : vector<8x384xf32> to vector<8x128xf32>
    %29 = vector.extract_strided_slice %11 {offsets = [0, 256], sizes = [8, 128], strides = [1, 1]} : vector<8x384xf32> to vector<8x128xf32>
    %30 = arith.mulf %19, %29 : vector<8x128xf32>
    %31 = arith.addf %28, %30 : vector<8x128xf32>
    %32 = math.tanh %31 : vector<8x128xf32>
    %cst_11 = arith.constant 1.000000e+00 : f32
    %33 = vector.broadcast %cst_11 : f32 to vector<8x128xf32>
    %34 = arith.subf %33, %27 : vector<8x128xf32>
    %35 = arith.mulf %34, %32 : vector<8x128xf32>
    %36 = arith.mulf %27, %5 : vector<8x128xf32>
    %37 = arith.addf %35, %36 : vector<8x128xf32>
    %c0_12 = arith.constant 0 : index
    %c0_13 = arith.constant 0 : index
    %38 = vector.load %arg6[%c0_12, %c0_13] : memref<8x128xf32, #tpu.memory_space<vmem>>, vector<8x128xf32>
    tpu.vector_store %arg6[%c0_12, %c0_13], %37 {strides = array<i32>} : memref<8x128xf32, #tpu.memory_space<vmem>>, vector<8x128xf32>,
    %c0_14 = arith.constant 0 : index
    %c0_15 = arith.constant 0 : index
    %c0_16 = arith.constant 0 : index
    %39 = vector.load %arg4[%c0_14, %c0_15, %c0_16] : memref<1x8x128xf32, #tpu.memory_space<vmem>>, vector<1x8x128xf32>
    %40 = vector.shape_cast %39 : vector<1x8x128xf32> to vector<8x128xf32>
    %41 = vector.shape_cast %37 : vector<8x128xf32> to vector<1x8x128xf32>
    tpu.vector_store %arg4[%c0_14, %c0_15, %c0_16], %41 {strides = array<i32>} : memref<1x8x128xf32, #tpu.memory_space<vmem>>, vector<1x8x128xf32>,
    %c0_17 = arith.constant 0 : index
    %c0_18 = arith.constant 0 : index
    %42 = vector.load %arg5[%c0_17, %c0_18] : memref<8x128xf32, #tpu.memory_space<vmem>>, vector<8x128xf32>
    tpu.vector_store %arg5[%c0_17, %c0_18], %37 {strides = array<i32>} : memref<8x128xf32, #tpu.memory_space<vmem>>, vector<8x128xf32>,
    return
  }
  func.func @transform_0(%arg0: i32) -> (i32, i32, i32) {
    %c0_i32 = arith.constant 0 : i32
    %c0_i32_0 = arith.constant 0 : i32
    %c0_i32_1 = arith.constant 0 : i32
    return %arg0, %c0_i32, %c0_i32_0 : i32, i32, i32
  }
  func.func @transform_1(%arg0: i32) -> (i32, i32) {
    %c0_i32 = arith.constant 0 : i32
    %c0_i32_0 = arith.constant 0 : i32
    %c0_i32_1 = arith.constant 0 : i32
    return %c0_i32, %c0_i32_0 : i32, i32
  }
  func.func @transform_2(%arg0: i32) -> (i32, i32) {
    %c0_i32 = arith.constant 0 : i32
    %c0_i32_0 = arith.constant 0 : i32
    %c0_i32_1 = arith.constant 0 : i32
    return %c0_i32, %c0_i32_0 : i32, i32
  }
  func.func @transform_3(%arg0: i32) -> (i32, i32, i32) {
    %c0_i32 = arith.constant 0 : i32
    %c0_i32_0 = arith.constant 0 : i32
    %c0_i32_1 = arith.constant 0 : i32
    return %arg0, %c0_i32, %c0_i32_0 : i32, i32, i32
  }
  func.func @transform_4(%arg0: i32) -> (i32, i32) {
    %c0_i32 = arith.constant 0 : i32
    %c0_i32_0 = arith.constant 0 : i32
    %c0_i32_1 = arith.constant 0 : i32
    return %c0_i32, %c0_i32_0 : i32, i32
  }
}

module attributes {stable_mosaic.version = 11 : i64} {
  func.func @_matmul_bias_kernel(%arg0: memref<64x128xf32, #tpu.memory_space<vmem>>, %arg1: memref<128x384xbf16, #tpu.memory_space<vmem>>, %arg2: memref<1x384xf32, #tpu.memory_space<vmem>>, %arg3: memref<64x384xf32, #tpu.memory_space<vmem>>) attributes {dimension_semantics = [], scalar_prefetch = 0 : i64, scratch_operands = 0 : i64, tpu.core_type = #tpu.core_type<tc>} {
    %c0 = arith.constant 0 : index
    %c0_0 = arith.constant 0 : index
    %0 = vector.load %arg0[%c0, %c0_0] : memref<64x128xf32, #tpu.memory_space<vmem>>, vector<64x128xf32>
    %1 = arith.truncf %0 : vector<64x128xf32> to vector<64x128xbf16>
    %c0_1 = arith.constant 0 : index
    %c0_2 = arith.constant 0 : index
    %2 = vector.load %arg1[%c0_1, %c0_2] : memref<128x384xbf16, #tpu.memory_space<vmem>>, vector<128x384xbf16>
    %cst = arith.constant dense<0.000000e+00> : vector<64x384xf32>
    %3 = tpu.matmul %1, %2, %cst {dimension_numbers = #tpu.dot_dimension_numbers<[1], [0], [0], [1], [0, 0, 1, 1], [], []>} : vector<64x128xbf16>, vector<128x384xbf16>, vector<64x384xf32> -> vector<64x384xf32>
    %c0_3 = arith.constant 0 : index
    %c0_4 = arith.constant 0 : index
    %4 = vector.load %arg2[%c0_3, %c0_4] : memref<1x384xf32, #tpu.memory_space<vmem>>, vector<1x384xf32>
    %5 = vector.broadcast %4 : vector<1x384xf32> to vector<64x384xf32>
    %6 = arith.addf %3, %5 : vector<64x384xf32>
    %c0_5 = arith.constant 0 : index
    %c0_6 = arith.constant 0 : index
    %7 = vector.load %arg3[%c0_5, %c0_6] : memref<64x384xf32, #tpu.memory_space<vmem>>, vector<64x384xf32>
    tpu.vector_store %arg3[%c0_5, %c0_6], %6 {strides = array<i32>} : memref<64x384xf32, #tpu.memory_space<vmem>>, vector<64x384xf32>,
    return
  }
}

module attributes {stable_mosaic.version = 11 : i64} {
  func.func @_matmul_bias_kernel(%arg0: memref<64x128xf32, #tpu.memory_space<vmem>>, %arg1: memref<128x128xbf16, #tpu.memory_space<vmem>>, %arg2: memref<1x128xf32, #tpu.memory_space<vmem>>, %arg3: memref<64x128xf32, #tpu.memory_space<vmem>>) attributes {dimension_semantics = [], scalar_prefetch = 0 : i64, scratch_operands = 0 : i64, tpu.core_type = #tpu.core_type<tc>} {
    %c0 = arith.constant 0 : index
    %c0_0 = arith.constant 0 : index
    %0 = vector.load %arg0[%c0, %c0_0] : memref<64x128xf32, #tpu.memory_space<vmem>>, vector<64x128xf32>
    %1 = arith.truncf %0 : vector<64x128xf32> to vector<64x128xbf16>
    %c0_1 = arith.constant 0 : index
    %c0_2 = arith.constant 0 : index
    %2 = vector.load %arg1[%c0_1, %c0_2] : memref<128x128xbf16, #tpu.memory_space<vmem>>, vector<128x128xbf16>
    %cst = arith.constant dense<0.000000e+00> : vector<64x128xf32>
    %3 = tpu.matmul %1, %2, %cst {dimension_numbers = #tpu.dot_dimension_numbers<[1], [0], [0], [1], [0, 0, 1, 1], [], []>} : vector<64x128xbf16>, vector<128x128xbf16>, vector<64x128xf32> -> vector<64x128xf32>
    %c0_3 = arith.constant 0 : index
    %c0_4 = arith.constant 0 : index
    %4 = vector.load %arg2[%c0_3, %c0_4] : memref<1x128xf32, #tpu.memory_space<vmem>>, vector<1x128xf32>
    %5 = vector.broadcast %4 : vector<1x128xf32> to vector<64x128xf32>
    %6 = arith.addf %3, %5 : vector<64x128xf32>
    %c0_5 = arith.constant 0 : index
    %c0_6 = arith.constant 0 : index
    %7 = vector.load %arg3[%c0_5, %c0_6] : memref<64x128xf32, #tpu.memory_space<vmem>>, vector<64x128xf32>
    tpu.vector_store %arg3[%c0_5, %c0_6], %6 {strides = array<i32>} : memref<64x128xf32, #tpu.memory_space<vmem>>, vector<64x128xf32>,
    return
  }
}

module attributes {stable_mosaic.version = 11 : i64} {
  func.func @_decoder_fused_kernel(%arg0: i32, %arg1: memref<5xi32, #tpu.memory_space<smem>>, %arg2: memref<1x8x128xf32, #tpu.memory_space<vmem>>, %arg3: memref<8x128xf32, #tpu.memory_space<vmem>>, %arg4: memref<8x8x128xf32, #tpu.memory_space<vmem>>, %arg5: memref<8x8x128xf32, #tpu.memory_space<vmem>>, %arg6: memref<128x128xbf16, #tpu.memory_space<vmem>>, %arg7: memref<1x128xf32, #tpu.memory_space<vmem>>, %arg8: memref<256x384xbf16, #tpu.memory_space<vmem>>, %arg9: memref<128x384xbf16, #tpu.memory_space<vmem>>, %arg10: memref<1x384xf32, #tpu.memory_space<vmem>>, %arg11: memref<1x384xf32, #tpu.memory_space<vmem>>, %arg12: memref<384x128xbf16, #tpu.memory_space<vmem>>, %arg13: memref<1x128xf32, #tpu.memory_space<vmem>>, %arg14: memref<1x8x128xf32, #tpu.memory_space<vmem>>, %arg15: memref<8x128xf32, #tpu.memory_space<vmem>>, %arg16: memref<8x128xf32, #tpu.memory_space<vmem>>) attributes {dimension_semantics = [#tpu.dimension_semantics<arbitrary>], iteration_bounds = array<i64: 5>, scalar_prefetch = 1 : i64, scratch_operands = 2 : i64, tpu.core_type = #tpu.core_type<tc>, window_params = [{transform_indices = @transform_0, window_bounds = array<i64: 1, 8, 128>}, {pipeline_mode = #tpu.pipeline_mode<synchronous>, transform_indices = @transform_1, window_bounds = array<i64: 8, 128>}, {pipeline_mode = #tpu.pipeline_mode<synchronous>, transform_indices = @transform_2, window_bounds = array<i64: 8, 8, 128>}, {pipeline_mode = #tpu.pipeline_mode<synchronous>, transform_indices = @transform_3, window_bounds = array<i64: 8, 8, 128>}, {pipeline_mode = #tpu.pipeline_mode<synchronous>, transform_indices = @transform_4, window_bounds = array<i64: 128, 128>}, {pipeline_mode = #tpu.pipeline_mode<synchronous>, transform_indices = @transform_5, window_bounds = array<i64: 1, 128>}, {pipeline_mode = #tpu.pipeline_mode<synchronous>, transform_indices = @transform_6, window_bounds = array<i64: 256, 384>}, {pipeline_mode = #tpu.pipeline_mode<synchronous>, transform_indices = @transform_7, window_bounds = array<i64: 128, 384>}, {pipeline_mode = #tpu.pipeline_mode<synchronous>, transform_indices = @transform_8, window_bounds = array<i64: 1, 384>}, {pipeline_mode = #tpu.pipeline_mode<synchronous>, transform_indices = @transform_9, window_bounds = array<i64: 1, 384>}, {pipeline_mode = #tpu.pipeline_mode<synchronous>, transform_indices = @transform_10, window_bounds = array<i64: 384, 128>}, {pipeline_mode = #tpu.pipeline_mode<synchronous>, transform_indices = @transform_11, window_bounds = array<i64: 1, 128>}, {transform_indices = @transform_12, window_bounds = array<i64: 1, 8, 128>}]} {
    %c0_i32 = arith.constant 0 : i32
    %0 = arith.cmpi eq, %arg0, %c0_i32 : i32
    %1 = arith.extui %0 : i1 to i32
    %c0_i32_0 = arith.constant 0 : i32
    %2 = arith.cmpi ne, %1, %c0_i32_0 : i32
    scf.if %2 {
      %c0_48 = arith.constant 0 : index
      %c0_49 = arith.constant 0 : index
      %96 = vector.load %arg3[%c0_48, %c0_49] : memref<8x128xf32, #tpu.memory_space<vmem>>, vector<8x128xf32>
      %c0_50 = arith.constant 0 : index
      %c0_51 = arith.constant 0 : index
      %97 = vector.load %arg15[%c0_50, %c0_51] : memref<8x128xf32, #tpu.memory_space<vmem>>, vector<8x128xf32>
      tpu.vector_store %arg15[%c0_50, %c0_51], %96 {strides = array<i32>} : memref<8x128xf32, #tpu.memory_space<vmem>>, vector<8x128xf32>,
      %cst_52 = arith.constant 0.000000e+00 : f32
      %98 = vector.broadcast %cst_52 : f32 to vector<8x128xf32>
      %c0_53 = arith.constant 0 : index
      %c0_54 = arith.constant 0 : index
      %99 = vector.load %arg16[%c0_53, %c0_54] : memref<8x128xf32, #tpu.memory_space<vmem>>, vector<8x128xf32>
      tpu.vector_store %arg16[%c0_53, %c0_54], %98 {strides = array<i32>} : memref<8x128xf32, #tpu.memory_space<vmem>>, vector<8x128xf32>,
    } else {
    }
    %3 = arith.index_cast %arg0 : i32 to index
    %4 = memref.load %arg1[%3] : memref<5xi32, #tpu.memory_space<smem>>
    %c0_i32_1 = arith.constant 0 : i32
    %5 = arith.cmpi sgt, %4, %c0_i32_1 : i32
    %6 = arith.extui %5 : i1 to i32
    %7 = arith.sitofp %6 : i32 to f32
    %c0 = arith.constant 0 : index
    %c0_2 = arith.constant 0 : index
    %c0_3 = arith.constant 0 : index
    %8 = vector.load %arg2[%c0, %c0_2, %c0_3] : memref<1x8x128xf32, #tpu.memory_space<vmem>>, vector<1x8x128xf32>
    %9 = vector.shape_cast %8 : vector<1x8x128xf32> to vector<8x128xf32>
    %10 = vector.broadcast %7 : f32 to vector<8x128xf32>
    %11 = arith.mulf %10, %9 : vector<8x128xf32>
    %cst = arith.constant 1.000000e+00 : f32
    %12 = arith.subf %cst, %7 : f32
    %c0_4 = arith.constant 0 : index
    %c0_5 = arith.constant 0 : index
    %13 = vector.load %arg16[%c0_4, %c0_5] : memref<8x128xf32, #tpu.memory_space<vmem>>, vector<8x128xf32>
    %14 = vector.broadcast %12 : f32 to vector<8x128xf32>
    %15 = arith.mulf %14, %13 : vector<8x128xf32>
    %16 = arith.addf %11, %15 : vector<8x128xf32>
    %c0_6 = arith.constant 0 : index
    %c0_7 = arith.constant 0 : index
    %17 = vector.load %arg15[%c0_6, %c0_7] : memref<8x128xf32, #tpu.memory_space<vmem>>, vector<8x128xf32>
    %18 = arith.truncf %17 : vector<8x128xf32> to vector<8x128xbf16>
    %c0_8 = arith.constant 0 : index
    %c0_9 = arith.constant 0 : index
    %19 = vector.load %arg6[%c0_8, %c0_9] : memref<128x128xbf16, #tpu.memory_space<vmem>>, vector<128x128xbf16>
    %cst_10 = arith.constant dense<0.000000e+00> : vector<8x128xf32>
    %20 = tpu.matmul %18, %19, %cst_10 {dimension_numbers = #tpu.dot_dimension_numbers<[1], [0], [0], [1], [0, 0, 1, 1], [], []>} : vector<8x128xbf16>, vector<128x128xbf16>, vector<8x128xf32> -> vector<8x128xf32>
    %c0_11 = arith.constant 0 : index
    %c0_12 = arith.constant 0 : index
    %c0_13 = arith.constant 0 : index
    %21 = vector.load %arg5[%c0_11, %c0_12, %c0_13] : memref<8x8x128xf32, #tpu.memory_space<vmem>>, vector<8x8x128xf32>
    %22 = vector.shape_cast %20 : vector<8x128xf32> to vector<1x8x128xf32>
    %23 = vector.broadcast %22 : vector<1x8x128xf32> to vector<8x8x128xf32>
    %24 = arith.addf %21, %23 : vector<8x8x128xf32>
    %25 = math.tanh %24 : vector<8x8x128xf32>
    %c0_14 = arith.constant 0 : index
    %c0_15 = arith.constant 0 : index
    %26 = vector.load %arg7[%c0_14, %c0_15] : memref<1x128xf32, #tpu.memory_space<vmem>>, vector<1x128xf32>
    %27 = vector.shape_cast %26 : vector<1x128xf32> to vector<1x1x128xf32>
    %28 = vector.broadcast %27 : vector<1x1x128xf32> to vector<8x8x128xf32>
    %29 = arith.mulf %25, %28 : vector<8x8x128xf32>
    %cst_16 = arith.constant dense<0.000000e+00> : vector<8x8xf32>
    %30 = vector.multi_reduction <add>, %29, %cst_16 [2] : vector<8x8x128xf32> to vector<8x8xf32>
    %31 = vector.shape_cast %30 : vector<8x8xf32> to vector<8x8x1xf32>
    %cst_17 = arith.constant dense<0xFF800000> : vector<8x1xf32>
    %32 = vector.multi_reduction <maximumf>, %31, %cst_17 [0] : vector<8x8x1xf32> to vector<8x1xf32>
    %33 = vector.shape_cast %32 : vector<8x1xf32> to vector<1x8x1xf32>
    %34 = vector.broadcast %33 : vector<1x8x1xf32> to vector<8x8x1xf32>
    %35 = arith.subf %31, %34 : vector<8x8x1xf32>
    %36 = math.exp %35 : vector<8x8x1xf32>
    %cst_18 = arith.constant dense<0.000000e+00> : vector<8x1xf32>
    %37 = vector.multi_reduction <add>, %36, %cst_18 [0] : vector<8x8x1xf32> to vector<8x1xf32>
    %38 = vector.shape_cast %37 : vector<8x1xf32> to vector<1x8x1xf32>
    %39 = vector.broadcast %38 : vector<1x8x1xf32> to vector<8x8x1xf32>
    %40 = arith.divf %36, %39 : vector<8x8x1xf32>
    %c0_19 = arith.constant 0 : index
    %c0_20 = arith.constant 0 : index
    %c0_21 = arith.constant 0 : index
    %41 = vector.load %arg4[%c0_19, %c0_20, %c0_21] : memref<8x8x128xf32, #tpu.memory_space<vmem>>, vector<8x8x128xf32>
    %42 = vector.broadcast %40 : vector<8x8x1xf32> to vector<8x8x128xf32>
    %43 = arith.mulf %42, %41 : vector<8x8x128xf32>
    %cst_22 = arith.constant dense<0.000000e+00> : vector<8x128xf32>
    %44 = vector.multi_reduction <add>, %43, %cst_22 [0] : vector<8x8x128xf32> to vector<8x128xf32>
    %45 = tpu.concatenate %16, %44 in 1 : vector<8x128xf32>, vector<8x128xf32> -> vector<8x256xf32>
    %46 = arith.truncf %45 : vector<8x256xf32> to vector<8x256xbf16>
    %c0_23 = arith.constant 0 : index
    %c0_24 = arith.constant 0 : index
    %47 = vector.load %arg8[%c0_23, %c0_24] : memref<256x384xbf16, #tpu.memory_space<vmem>>, vector<256x384xbf16>
    %cst_25 = arith.constant dense<0.000000e+00> : vector<8x384xf32>
    %48 = tpu.matmul %46, %47, %cst_25 {dimension_numbers = #tpu.dot_dimension_numbers<[1], [0], [0], [1], [0, 0, 1, 1], [], []>} : vector<8x256xbf16>, vector<256x384xbf16>, vector<8x384xf32> -> vector<8x384xf32>
    %c0_26 = arith.constant 0 : index
    %c0_27 = arith.constant 0 : index
    %49 = vector.load %arg10[%c0_26, %c0_27] : memref<1x384xf32, #tpu.memory_space<vmem>>, vector<1x384xf32>
    %50 = vector.broadcast %49 : vector<1x384xf32> to vector<8x384xf32>
    %51 = arith.addf %48, %50 : vector<8x384xf32>
    %52 = arith.truncf %17 : vector<8x128xf32> to vector<8x128xbf16>
    %c0_28 = arith.constant 0 : index
    %c0_29 = arith.constant 0 : index
    %53 = vector.load %arg9[%c0_28, %c0_29] : memref<128x384xbf16, #tpu.memory_space<vmem>>, vector<128x384xbf16>
    %cst_30 = arith.constant dense<0.000000e+00> : vector<8x384xf32>
    %54 = tpu.matmul %52, %53, %cst_30 {dimension_numbers = #tpu.dot_dimension_numbers<[1], [0], [0], [1], [0, 0, 1, 1], [], []>} : vector<8x128xbf16>, vector<128x384xbf16>, vector<8x384xf32> -> vector<8x384xf32>
    %c0_31 = arith.constant 0 : index
    %c0_32 = arith.constant 0 : index
    %55 = vector.load %arg11[%c0_31, %c0_32] : memref<1x384xf32, #tpu.memory_space<vmem>>, vector<1x384xf32>
    %56 = vector.broadcast %55 : vector<1x384xf32> to vector<8x384xf32>
    %57 = arith.addf %54, %56 : vector<8x384xf32>
    %58 = vector.extract_strided_slice %51 {offsets = [0, 0], sizes = [8, 128], strides = [1, 1]} : vector<8x384xf32> to vector<8x128xf32>
    %59 = vector.extract_strided_slice %57 {offsets = [0, 0], sizes = [8, 128], strides = [1, 1]} : vector<8x384xf32> to vector<8x128xf32>
    %60 = arith.addf %58, %59 : vector<8x128xf32>
    %61 = arith.negf %60 : vector<8x128xf32>
    %62 = math.exp %61 : vector<8x128xf32>
    %cst_33 = arith.constant 1.000000e+00 : f32
    %63 = vector.broadcast %cst_33 : f32 to vector<8x128xf32>
    %64 = arith.addf %63, %62 : vector<8x128xf32>
    %65 = arith.divf %63, %64 : vector<8x128xf32>
    %66 = vector.extract_strided_slice %51 {offsets = [0, 128], sizes = [8, 128], strides = [1, 1]} : vector<8x384xf32> to vector<8x128xf32>
    %67 = vector.extract_strided_slice %57 {offsets = [0, 128], sizes = [8, 128], strides = [1, 1]} : vector<8x384xf32> to vector<8x128xf32>
    %68 = arith.addf %66, %67 : vector<8x128xf32>
    %69 = arith.negf %68 : vector<8x128xf32>
    %70 = math.exp %69 : vector<8x128xf32>
    %cst_34 = arith.constant 1.000000e+00 : f32
    %71 = vector.broadcast %cst_34 : f32 to vector<8x128xf32>
    %72 = arith.addf %71, %70 : vector<8x128xf32>
    %73 = arith.divf %71, %72 : vector<8x128xf32>
    %74 = vector.extract_strided_slice %51 {offsets = [0, 256], sizes = [8, 128], strides = [1, 1]} : vector<8x384xf32> to vector<8x128xf32>
    %75 = vector.extract_strided_slice %57 {offsets = [0, 256], sizes = [8, 128], strides = [1, 1]} : vector<8x384xf32> to vector<8x128xf32>
    %76 = arith.mulf %65, %75 : vector<8x128xf32>
    %77 = arith.addf %74, %76 : vector<8x128xf32>
    %78 = math.tanh %77 : vector<8x128xf32>
    %cst_35 = arith.constant 1.000000e+00 : f32
    %79 = vector.broadcast %cst_35 : f32 to vector<8x128xf32>
    %80 = arith.subf %79, %73 : vector<8x128xf32>
    %81 = arith.mulf %80, %78 : vector<8x128xf32>
    %82 = arith.mulf %73, %17 : vector<8x128xf32>
    %83 = arith.addf %81, %82 : vector<8x128xf32>
    %84 = tpu.concatenate %83, %44, %16 in 1 : vector<8x128xf32>, vector<8x128xf32>, vector<8x128xf32> -> vector<8x384xf32>
    %85 = arith.truncf %84 : vector<8x384xf32> to vector<8x384xbf16>
    %c0_36 = arith.constant 0 : index
    %c0_37 = arith.constant 0 : index
    %86 = vector.load %arg12[%c0_36, %c0_37] : memref<384x128xbf16, #tpu.memory_space<vmem>>, vector<384x128xbf16>
    %cst_38 = arith.constant dense<0.000000e+00> : vector<8x128xf32>
    %87 = tpu.matmul %85, %86, %cst_38 {dimension_numbers = #tpu.dot_dimension_numbers<[1], [0], [0], [1], [0, 0, 1, 1], [], []>} : vector<8x384xbf16>, vector<384x128xbf16>, vector<8x128xf32> -> vector<8x128xf32>
    %c0_39 = arith.constant 0 : index
    %c0_40 = arith.constant 0 : index
    %88 = vector.load %arg13[%c0_39, %c0_40] : memref<1x128xf32, #tpu.memory_space<vmem>>, vector<1x128xf32>
    %89 = vector.broadcast %88 : vector<1x128xf32> to vector<8x128xf32>
    %90 = arith.addf %87, %89 : vector<8x128xf32>
    %c0_41 = arith.constant 0 : index
    %c0_42 = arith.constant 0 : index
    %c0_43 = arith.constant 0 : index
    %91 = vector.load %arg14[%c0_41, %c0_42, %c0_43] : memref<1x8x128xf32, #tpu.memory_space<vmem>>, vector<1x8x128xf32>
    %92 = vector.shape_cast %91 : vector<1x8x128xf32> to vector<8x128xf32>
    %93 = vector.shape_cast %90 : vector<8x128xf32> to vector<1x8x128xf32>
    tpu.vector_store %arg14[%c0_41, %c0_42, %c0_43], %93 {strides = array<i32>} : memref<1x8x128xf32, #tpu.memory_space<vmem>>, vector<1x8x128xf32>,
    %c0_44 = arith.constant 0 : index
    %c0_45 = arith.constant 0 : index
    %94 = vector.load %arg15[%c0_44, %c0_45] : memref<8x128xf32, #tpu.memory_space<vmem>>, vector<8x128xf32>
    tpu.vector_store %arg15[%c0_44, %c0_45], %83 {strides = array<i32>} : memref<8x128xf32, #tpu.memory_space<vmem>>, vector<8x128xf32>,
    %c0_46 = arith.constant 0 : index
    %c0_47 = arith.constant 0 : index
    %95 = vector.load %arg16[%c0_46, %c0_47] : memref<8x128xf32, #tpu.memory_space<vmem>>, vector<8x128xf32>
    tpu.vector_store %arg16[%c0_46, %c0_47], %90 {strides = array<i32>} : memref<8x128xf32, #tpu.memory_space<vmem>>, vector<8x128xf32>,
    return
  }
  func.func @transform_0(%arg0: i32, %arg1: memref<5xi32, #tpu.memory_space<smem>>) -> (i32, i32, i32) {
    %c0_i32 = arith.constant 0 : i32
    %c0_i32_0 = arith.constant 0 : i32
    %c0_i32_1 = arith.constant 0 : i32
    return %arg0, %c0_i32, %c0_i32_0 : i32, i32, i32
  }
  func.func @transform_1(%arg0: i32, %arg1: memref<5xi32, #tpu.memory_space<smem>>) -> (i32, i32) {
    %c0_i32 = arith.constant 0 : i32
    %c0_i32_0 = arith.constant 0 : i32
    %c0_i32_1 = arith.constant 0 : i32
    return %c0_i32, %c0_i32_0 : i32, i32
  }
  func.func @transform_2(%arg0: i32, %arg1: memref<5xi32, #tpu.memory_space<smem>>) -> (i32, i32, i32) {
    %c0_i32 = arith.constant 0 : i32
    %c0_i32_0 = arith.constant 0 : i32
    %c0_i32_1 = arith.constant 0 : i32
    %c0_i32_2 = arith.constant 0 : i32
    return %c0_i32, %c0_i32_0, %c0_i32_1 : i32, i32, i32
  }
  func.func @transform_3(%arg0: i32, %arg1: memref<5xi32, #tpu.memory_space<smem>>) -> (i32, i32, i32) {
    %c0_i32 = arith.constant 0 : i32
    %c0_i32_0 = arith.constant 0 : i32
    %c0_i32_1 = arith.constant 0 : i32
    %c0_i32_2 = arith.constant 0 : i32
    return %c0_i32, %c0_i32_0, %c0_i32_1 : i32, i32, i32
  }
  func.func @transform_4(%arg0: i32, %arg1: memref<5xi32, #tpu.memory_space<smem>>) -> (i32, i32) {
    %c0_i32 = arith.constant 0 : i32
    %c0_i32_0 = arith.constant 0 : i32
    %c0_i32_1 = arith.constant 0 : i32
    return %c0_i32, %c0_i32_0 : i32, i32
  }
  func.func @transform_5(%arg0: i32, %arg1: memref<5xi32, #tpu.memory_space<smem>>) -> (i32, i32) {
    %c0_i32 = arith.constant 0 : i32
    %c0_i32_0 = arith.constant 0 : i32
    %c0_i32_1 = arith.constant 0 : i32
    return %c0_i32, %c0_i32_0 : i32, i32
  }
  func.func @transform_6(%arg0: i32, %arg1: memref<5xi32, #tpu.memory_space<smem>>) -> (i32, i32) {
    %c0_i32 = arith.constant 0 : i32
    %c0_i32_0 = arith.constant 0 : i32
    %c0_i32_1 = arith.constant 0 : i32
    return %c0_i32, %c0_i32_0 : i32, i32
  }
  func.func @transform_7(%arg0: i32, %arg1: memref<5xi32, #tpu.memory_space<smem>>) -> (i32, i32) {
    %c0_i32 = arith.constant 0 : i32
    %c0_i32_0 = arith.constant 0 : i32
    %c0_i32_1 = arith.constant 0 : i32
    return %c0_i32, %c0_i32_0 : i32, i32
  }
  func.func @transform_8(%arg0: i32, %arg1: memref<5xi32, #tpu.memory_space<smem>>) -> (i32, i32) {
    %c0_i32 = arith.constant 0 : i32
    %c0_i32_0 = arith.constant 0 : i32
    %c0_i32_1 = arith.constant 0 : i32
    return %c0_i32, %c0_i32_0 : i32, i32
  }
  func.func @transform_9(%arg0: i32, %arg1: memref<5xi32, #tpu.memory_space<smem>>) -> (i32, i32) {
    %c0_i32 = arith.constant 0 : i32
    %c0_i32_0 = arith.constant 0 : i32
    %c0_i32_1 = arith.constant 0 : i32
    return %c0_i32, %c0_i32_0 : i32, i32
  }
  func.func @transform_10(%arg0: i32, %arg1: memref<5xi32, #tpu.memory_space<smem>>) -> (i32, i32) {
    %c0_i32 = arith.constant 0 : i32
    %c0_i32_0 = arith.constant 0 : i32
    %c0_i32_1 = arith.constant 0 : i32
    return %c0_i32, %c0_i32_0 : i32, i32
  }
  func.func @transform_11(%arg0: i32, %arg1: memref<5xi32, #tpu.memory_space<smem>>) -> (i32, i32) {
    %c0_i32 = arith.constant 0 : i32
    %c0_i32_0 = arith.constant 0 : i32
    %c0_i32_1 = arith.constant 0 : i32
    return %c0_i32, %c0_i32_0 : i32, i32
  }
  func.func @transform_12(%arg0: i32, %arg1: memref<5xi32, #tpu.memory_space<smem>>) -> (i32, i32, i32) {
    %c0_i32 = arith.constant 0 : i32
    %c0_i32_0 = arith.constant 0 : i32
    %c0_i32_1 = arith.constant 0 : i32
    return %arg0, %c0_i32, %c0_i32_0 : i32, i32, i32
  }
}

</mosaic_0001>

<bundles_post_ra>
// kernel: _seq2seq_compute.4
= control target key start
LH: loop header
LB: loop body
LE: loop exit
PB: predicated region body
PF: predicated region fallthrough
CT: control target
= control target key end

     0   :  { %v463_v1 = vmov 0   ;;  %v61_v37 = vlaneseq  ;;  %s679_s1 = inlined_call_operand.vmem [shape: bf16[128,384], index: 1, kind: input, shape index: {}]   ;;  %s680_s0 = inlined_call_operand.vmem [shape: f32[64,128], index: 0, kind: input, shape index: {}]   ;;  %s681_s2 = inlined_call_operand.vmem [shape: f32[1,384], index: 2, kind: input, shape index: {}]   ;;  %s682_s3 = inlined_call_operand.vmem [shape: f32[64,384], index: 3, kind: output, shape index: {}]  }
   0x1   :  { %v431_v0 = vld [vmem:[%s679_s1 + $0x4] ss:$12 sps:$4 sm:$0xff]   ;;  %236 = vmatprep.mubr.bf16.mxu0 %v463_v1  ;;  %v433_v2 = vld [vmem:[%s679_s1] ss:$12 sps:$4 sm:$0xff]   ;;  %v434_v3 = vld [vmem:[%s679_s1 + $0x1c] ss:$12 sps:$4 sm:$0xff]  }
   0x2   :  { %204 = vmatprep.subr.bf16.mxu0 %v431_v0  ;;  %v436_v4 = vld [vmem:[%s679_s1 + $0x18] ss:$12 sps:$4 sm:$0xff]   ;;  %v437_v5 = vld [vmem:[%s679_s1 + $0x34] ss:$12 sps:$4 sm:$0xff]   ;;  %v439_v7 = vld [vmem:[%s679_s1 + $0x30] ss:$12 sps:$4 sm:$0xff]  }
   0x3   :  { %205 = vmatpush1.bf16.msra.mxu0 %v433_v2  ;;  %v443_v6 = vld [vmem:[%s679_s1 + $0x8] ss:$12 sps:$4 sm:$0xff]   ;;  %v440_v8 = vld [vmem:[%s679_s1 + $0x4c] ss:$12 sps:$4 sm:$0xff]   ;;  %v444_v12 = vld [vmem:[%s679_s1 + $0x64] ss:$12 sps:$4 sm:$0xff]  }
   0x4   :  { %206 = vmatprep.subr.bf16.mxu0 %v434_v3  ;;  %406 = vmatprep.subr.bf16.mxu1 %v443_v6  ;;  %v447_v9 = vld [vmem:[%s679_s1 + $0x20] ss:$12 sps:$4 sm:$0xff]   ;;  %v451_v10 = vld [vmem:[%s679_s1 + $0x38] ss:$12 sps:$4 sm:$0xff]   ;;  %v442_v11 = vld [vmem:[%s679_s1 + $0x48] ss:$12 sps:$4 sm:$0xff]  }
   0x5   :  { %407 = vmatpush3.bf16.msra.mxu1 %v443_v6  ;;  %v446_v13 = vld [vmem:[%s679_s1 + $0x60] ss:$12 sps:$4 sm:$0xff]   ;;  %v455_v14 = vld [vmem:[%s679_s1 + $0x50] ss:$12 sps:$4 sm:$0xff]   ;;  %v459_v19 = vld [vmem:[%s679_s1 + $0x68] ss:$12 sps:$4 sm:$0xff]  }
   0x6   :  { %408 = vmatprep.subr.bf16.mxu1 %v447_v9  ;;  %v448_v15 = vld [vmem:[%s679_s1 + $0x7c] ss:$12 sps:$4 sm:$0xff]   ;;  %v15_v16 = vld [vmem:[%s680_s0] sm:$0xff]  ;;  %v456_v24 = vld [vmem:[%s679_s1 + $0xac] ss:$12 sps:$4 sm:$0xff]   ;;  %v62_v38 = vshrl.u32 %v61_v37, 7 }
   0x7   :  { %207 = vmatpush1.bf16.msra.mxu0 %v436_v4  ;;  %v16_v17 = vld [vmem:[%s680_s0 + $0x8] sm:$0xff]  ;;  %v450_v20 = vld [vmem:[%s679_s1 + $0x78] ss:$12 sps:$4 sm:$0xff]   ;;  %v452_v21 = vld [vmem:[%s679_s1 + $0x94] ss:$12 sps:$4 sm:$0xff]  }
   0x8   :  { %208 = vmatprep.subr.bf16.mxu0 %v437_v5  ;;  %v23_v18 = vpack.c.bf16 %v16_v17, %v15_v16  ;;  %v460_v22 = vld [vmem:[%s679_s1 + $0x80] ss:$12 sps:$4 sm:$0xff]   ;;  %v454_v23 = vld [vmem:[%s679_s1 + $0x90] ss:$12 sps:$4 sm:$0xff]   ;;  %v461_v25 = vld [vmem:[%s679_s1 + $0x98] ss:$12 sps:$4 sm:$0xff]  }
   0x9   :  { %409 = vmatpush3.bf16.msra.mxu1 %v447_v9  ;;  %v458_v26 = vld [vmem:[%s679_s1 + $0xa8] ss:$12 sps:$4 sm:$0xff]   ;;  %v462_v27 = vld [vmem:[%s679_s1 + $0xb0] ss:$12 sps:$4 sm:$0xff]   ;;  %v19_v30 = vld [vmem:[%s680_s0 + $0x20] sm:$0xff]  ;;  %v63_v39 = vsub.s32 0, %v62_v38 }
   0xa   :  { %410 = vmatprep.subr.bf16.mxu1 %v451_v10  ;;  %422 = vmatprep.mubr.bf16.mxu1 %v23_v18  ;;  %v17_v28 = vld [vmem:[%s680_s0 + $0x10] sm:$0xff]  ;;  %v18_v29 = vld [vmem:[%s680_s0 + $0x18] sm:$0xff]  ;;  %v20_v31 = vld [vmem:[%s680_s0 + $0x28] sm:$0xff]  ;;  %v67_v41 = vsub.s32 1, %v62_v38  ;;  %v71_v44 = vsub.s32 2, %v62_v38 }
   0xb   :  { %209 = vmatpush1.bf16.msra.mxu0 %v439_v7  ;;  %v24_v32 = vpack.c.bf16 %v18_v29, %v17_v28  ;;  %v25_v33 = vpack.c.bf16 %v20_v31, %v19_v30  ;;  %v21_v34 = vld [vmem:[%s680_s0 + $0x30] sm:$0xff]  ;;  %v22_v35 = vld [vmem:[%s680_s0 + $0x38] sm:$0xff]  ;;  %v59_v40 = vld [vmem:[%s681_s2] sm:$0x7] }
   0xc   :  { %210 = vmatprep.subr.bf16.mxu0 %v440_v8  ;;  %v26_v36 = vpack.c.bf16 %v22_v35, %v21_v34  ;;  %v587_v42 = vrot.slane %v59_v40, %v63_v39  ;;  %v589_v43 = vrot.slane %v59_v40, %v67_v41  ;;  %v72_v52 = vrot.slane %v59_v40, %v71_v44 }
   0xd   :  { %411 = vmatpush3.bf16.msra.mxu1 %v451_v10 }
   0xe   :  { %412 = vmatprep.subr.bf16.mxu1 %v455_v14 }
   0xf   :  { %211 = vmatpush1.bf16.msra.mxu0 %v442_v11 }
  0x10   :  { %212 = vmatprep.subr.bf16.mxu0 %v444_v12 }
  0x11   :  { %413 = vmatpush3.bf16.msra.mxu1 %v455_v14 }
  0x12   :  { %414 = vmatprep.subr.bf16.mxu1 %v459_v19 }
  0x13   :  { %213 = vmatpush1.bf16.msra.mxu0 %v446_v13 }
  0x14   :  { %214 = vmatprep.subr.bf16.mxu0 %v448_v15 }
  0x15   :  { %415 = vmatpush3.bf16.msra.mxu1 %v459_v19 }
  0x16   :  { %416 = vmatprep.subr.bf16.mxu1 %v460_v22 }
  0x17   :  { %215 = vmatpush1.bf16.msra.mxu0 %v450_v20 }
  0x18   :  { %216 = vmatprep.subr.bf16.mxu0 %v452_v21 }
  0x19   :  { %417 = vmatpush3.bf16.msra.mxu1 %v460_v22 }
  0x1a   :  { %418 = vmatprep.subr.bf16.mxu1 %v461_v25 }
  0x1b   :  { %217 = vmatpush1.bf16.msra.mxu0 %v454_v23 }
  0x1c   :  { %218 = vmatprep.subr.bf16.mxu0 %v456_v24 }
  0x1d   :  { %419 = vmatpush3.bf16.msra.mxu1 %v461_v25 }
  0x1e   :  { %420 = vmatprep.subr.bf16.mxu1 %v462_v27 }
  0x1f   :  { %219 = vmatpush1.bf16.msra.mxu0 %v458_v26 }
  0x21   :  { %421 = vmatpush3.bf16.msra.mxu1 %v462_v27 }
  0x22   :  { %237 = vmatmul.mubr.bf16.vlgmr.msra.gmra.mrb[0].mxu0 %v23_v18 }
  0x23   :  { %246 = vmatprep.mubr.bf16.mxu0 %v463_v1 }
  0x24   :  { %423 = vmatmul.mubr.bf16.vlgmr.msra.gmra.mrb[0].mxu1 %v24_v32 }
  0x25   :  { %426 = vmatprep.mubr.bf16.mxu1 %v25_v33 }
  0x2a   :  { %247 = vmatmul.mubr.bf16.gmra.mrb[4].mxu0 %v24_v32 }
  0x2b   :  { %256 = vmatprep.mubr.bf16.mxu0 %v463_v1 }
  0x2c   :  { %427 = vmatmul.mubr.bf16.gmra.mrb[4].mxu1 %v26_v36 }
  0x32   :  { %257 = vmatmul.mubr.bf16.gmra.mrb[8].mxu0 %v25_v33 }
  0x33   :  { %266 = vmatprep.mubr.bf16.mxu0 %v463_v1 }
  0x3a   :  { %267 = vmatmul.mubr.bf16.gmra.mrb[12].mxu0 %v26_v36 }
  0xf5   :  { %v238_v45 = vpop.f32.mrb[0].mxu0 }
  0xf6   :  { %v239_v46 = vadd.f32 %v238_v45, %v587_v42  ;;  %v240_v47 = vpop.f32.mrb[1].mxu0 }
  0xf7   :  { %v241_v48 = vadd.f32 %v240_v47, %v589_v43  ;;  %v242_v49 = vpop.f32.mrb[2].mxu0  ;;  %v424_v54 = vpop.f32.mrb[0].mxu1 }
  0xf8   :  { %342 = vst [vmem:[%s682_s3] sm:$0xff] %v239_v46  ;;  %v243_v50 = vadd.f32 %v242_v49, %v587_v42  ;;  %v244_v51 = vpop.f32.mrb[3].mxu0  ;;  %v320_v55 = vadd.f32 %v424_v54, %v72_v52  ;;  %v311_v56 = vpop.f32.mrb[1].mxu1 }
  0xf9   :  { %343 = vst [vmem:[%s682_s3 + $0x8] sm:$0xff] %v241_v48  ;;  %v245_v53 = vadd.f32 %v244_v51, %v589_v43  ;;  %v312_v58 = vadd.f32 %v311_v56, %v72_v52  ;;  %v425_v59 = vpop.f32.mrb[2].mxu1 }
  0xfa   :  { %345 = vst [vmem:[%s682_s3 + $0x18] sm:$0xff] %v243_v50  ;;  %350 = vst [vmem:[%s682_s3 + $0x40] sm:$0xff] %v320_v55  ;;  %v323_v62 = vadd.f32 %v425_v59, %v72_v52  ;;  %v314_v63 = vpop.f32.mrb[3].mxu1 }
  0xfb   :  { %346 = vst [vmem:[%s682_s3 + $0x20] sm:$0xff] %v245_v53  ;;  %344 = vst [vmem:[%s682_s3 + $0x10] sm:$0xff] %v312_v58  ;;  %v315_v2 = vadd.f32 %v314_v63, %v72_v52 }
  0xfc   :  { %353 = vst [vmem:[%s682_s3 + $0x58] sm:$0xff] %v323_v62 }
  0xfd   :  { %v248_v57 = vpop.f32.mrb[4].mxu0  ;;  %347 = vst [vmem:[%s682_s3 + $0x28] sm:$0xff] %v315_v2 }
  0xfe   :  { %v249_v60 = vadd.f32 %v248_v57, %v587_v42  ;;  %v250_v61 = vpop.f32.mrb[5].mxu0 }
  0xff   :  { %v251_v0 = vadd.f32 %v250_v61, %v589_v43  ;;  %v252_v1 = vpop.f32.mrb[6].mxu0  ;;  %v428_v6 = vpop.f32.mrb[4].mxu1 }
 0x100   :  { %348 = vst [vmem:[%s682_s3 + $0x30] sm:$0xff] %v249_v60  ;;  %v253_v3 = vadd.f32 %v252_v1, %v587_v42  ;;  %v254_v4 = vpop.f32.mrb[7].mxu0  ;;  %v336_v7 = vadd.f32 %v428_v6, %v72_v52  ;;  %v327_v8 = vpop.f32.mrb[5].mxu1 }
 0x101   :  { %349 = vst [vmem:[%s682_s3 + $0x38] sm:$0xff] %v251_v0  ;;  %v255_v5 = vadd.f32 %v254_v4, %v589_v43  ;;  %v328_v10 = vadd.f32 %v327_v8, %v72_v52  ;;  %v429_v11 = vpop.f32.mrb[6].mxu1 }
 0x102   :  { %351 = vst [vmem:[%s682_s3 + $0x48] sm:$0xff] %v253_v3  ;;  %362 = vst [vmem:[%s682_s3 + $0xa0] sm:$0xff] %v336_v7  ;;  %v339_v14 = vadd.f32 %v429_v11, %v72_v52  ;;  %v330_v15 = vpop.f32.mrb[7].mxu1 }
 0x103   :  { %352 = vst [vmem:[%s682_s3 + $0x50] sm:$0xff] %v255_v5  ;;  %356 = vst [vmem:[%s682_s3 + $0x70] sm:$0xff] %v328_v10  ;;  %v331_v18 = vadd.f32 %v330_v15, %v72_v52 }
 0x104   :  { %365 = vst [vmem:[%s682_s3 + $0xb8] sm:$0xff] %v339_v14 }
 0x105   :  { %v258_v9 = vpop.f32.mrb[8].mxu0  ;;  %359 = vst [vmem:[%s682_s3 + $0x88] sm:$0xff] %v331_v18 }
 0x106   :  { %v259_v12 = vadd.f32 %v258_v9, %v587_v42  ;;  %v260_v13 = vpop.f32.mrb[9].mxu0 }
 0x107   :  { %v261_v16 = vadd.f32 %v260_v13, %v589_v43  ;;  %v262_v17 = vpop.f32.mrb[10].mxu0 }
 0x108   :  { %354 = vst [vmem:[%s682_s3 + $0x60] sm:$0xff] %v259_v12  ;;  %v263_v19 = vadd.f32 %v262_v17, %v587_v42  ;;  %v264_v20 = vpop.f32.mrb[11].mxu0 }
 0x109   :  { %355 = vst [vmem:[%s682_s3 + $0x68] sm:$0xff] %v261_v16  ;;  %v265_v21 = vadd.f32 %v264_v20, %v589_v43 }
 0x10a   :  { %357 = vst [vmem:[%s682_s3 + $0x78] sm:$0xff] %v263_v19 }
 0x10b   :  { %358 = vst [vmem:[%s682_s3 + $0x80] sm:$0xff] %v265_v21 }
 0x10d   :  { %v268_v22 = vpop.f32.mrb[12].mxu0 }
 0x10e   :  { %v269_v23 = vadd.f32 %v268_v22, %v587_v42  ;;  %v270_v24 = vpop.f32.mrb[13].mxu0 }
 0x10f   :  { %v271_v25 = vadd.f32 %v270_v24, %v589_v43  ;;  %v272_v26 = vpop.f32.mrb[14].mxu0 }
 0x110   :  { %360 = vst [vmem:[%s682_s3 + $0x90] sm:$0xff] %v269_v23  ;;  %v273_v27 = vadd.f32 %v272_v26, %v587_v42  ;;  %v274_v28 = vpop.f32.mrb[15].mxu0 }
 0x111   :  { %361 = vst [vmem:[%s682_s3 + $0x98] sm:$0xff] %v271_v25  ;;  %v275_v29 = vadd.f32 %v274_v28, %v589_v43 }
 0x112   :  { %363 = vst [vmem:[%s682_s3 + $0xa8] sm:$0xff] %v273_v27 }
 0x113   :  { %364 = vst [vmem:[%s682_s3 + $0xb0] sm:$0xff] %v275_v29 }

// kernel: _seq2seq_compute.5
= control target key start
LH: loop header
LB: loop body
LE: loop exit
PB: predicated region body
PF: predicated region fallthrough
CT: control target
= control target key end

     0   :  { %s703_s15 = smov 0   ;;  %s806_s0 = inlined_call_operand.vmem [shape: f32[8,8,384], index: 0, kind: input, shape index: {}]   ;;  %s807_s1 = inlined_call_operand.vmem [shape: bf16[128,384], index: 1, kind: input, shape index: {}]   ;;  %s808_s2 = inlined_call_operand.vmem [shape: f32[1,384], index: 2, kind: input, shape index: {}]   ;;  %s809_s3 = inlined_call_operand.vmem [shape: f32[8,8,128], index: 3, kind: output, shape index: {0}]   ;;  %s810_s4 = inlined_call_operand.vmem [shape: f32[8,128], index: 4, kind: output, shape index: {1}]  }
   0x1 LB: > { %s546_s16 = sadd.s32 4294967295, %s672_s15   ;;  %p550_p0 = scmp.ge.s32.totalorder %s672_s15, 1  ;;  %s672_s15 = sphi %s703_s15, %s15_s15  }
   0x2   : > { %p160_p1 = scmp.lt.s32.totalorder %s672_s15, 9 }
   0x4   : > { %p161_p2 = pnand %p550_p0, %p160_p1 }
   0x5   : > { %p185_p3 = scmp.lt.s32.totalorder (!%p161_p2), %s546_s16, 7  ;;  %p553_p4 = scmp.ne.s32.totalorder (!%p161_p2), %s546_s16, 0 }
   0x6   : > { %164 = sbr.rel (%p161_p2) target bundleno = 318 (0x13e), region = 32 }
   0xd   : > { %s186_s17 = scalar_select %p185_p3, %s546_s16, 7 }
   0xe   : > { %198 = sbr.rel (%p553_p4) target bundleno = 21 (0x15), region = 36  ;;  %v674_v0 = vmov (!%p553_p4), 0.0  }
   0xf   : > { %s611_s18 = smul.u32 24, %s186_s17  ;;  %s552_s19 = sshll.u32 %s186_s17, 3  ;;  %199 = vst [vmem:[#allocation2] sm:$0xff] (!%p553_p4), %v674_v0 }
  0x10   : > { %s714_s22 = scalar_lea.vmem %s809_s3, %s552_s19 }
  0x11   : > { %s719_s25 = scalar_lea.vmem %s806_s0, %s611_s18 }
  0x15 PF: > { %v624_v1 = vld [vmem:[%s807_s1 + $0x4] ss:$12 sps:$4 sm:$0xff]   ;;  %v626_v2 = vld [vmem:[%s807_s1] ss:$12 sps:$4 sm:$0xff]   ;;  %v675_v3 = vmov 0.0   ;;  %v676_v4 = vmov 0   ;;  %v239_v29 = vlaneseq }
  0x16   : > { %591 = vmatprep.subr.bf16.mxu1 %v675_v3  ;;  %414 = vmatprep.mubr.bf16.mxu0 %v676_v4  ;;  %v627_v5 = vld [vmem:[%s807_s1 + $0x1c] ss:$12 sps:$4 sm:$0xff]   ;;  %vm677_vm0 = vmmov 0   ;;  %v629_v6 = vld [vmem:[%s807_s1 + $0x18] ss:$12 sps:$4 sm:$0xff]   ;;  %v202_v60 = vld [vmem:[%s719_s25 + $0x10] sm:$0xff] }
  0x17   : > { %382 = vmatprep.subr.bf16.mxu0 %v624_v1  ;;  %607 = vmatprep.mubr.msk.bf16.mxu1 %vm677_vm0, %v675_v3  ;;  %v630_v7 = vld [vmem:[%s807_s1 + $0x34] ss:$12 sps:$4 sm:$0xff]   ;;  %v632_v8 = vld [vmem:[%s807_s1 + $0x30] ss:$12 sps:$4 sm:$0xff]   ;;  %v633_v9 = vld [vmem:[%s807_s1 + $0x4c] ss:$12 sps:$4 sm:$0xff]  }
  0x18   : > { %383 = vmatpush1.bf16.msra.mxu0 %v626_v2  ;;  %v645_v10 = vld [vmem:[%s807_s1 + $0x8] ss:$12 sps:$4 sm:$0xff]   ;;  %v636_v12 = vld [vmem:[%s807_s1 + $0x64] ss:$12 sps:$4 sm:$0xff]   ;;  %v649_v13 = vld [vmem:[%s807_s1 + $0x20] ss:$12 sps:$4 sm:$0xff]  }
  0x19   : > { %384 = vmatprep.subr.bf16.mxu0 %v627_v5  ;;  %v635_v11 = vld [vmem:[%s807_s1 + $0x48] ss:$12 sps:$4 sm:$0xff]   ;;  %592 = vmatpush3.bf16.msra.mxu1 %v645_v10  ;;  %v638_v14 = vld [vmem:[%s807_s1 + $0x60] ss:$12 sps:$4 sm:$0xff]   ;;  %v650_v16 = vld [vmem:[%s807_s1 + $0x38] ss:$12 sps:$4 sm:$0xff]  }
  0x1a   : > { %593 = vmatprep.subr.bf16.mxu1 %v675_v3  ;;  %v639_v15 = vld [vmem:[%s807_s1 + $0x7c] ss:$12 sps:$4 sm:$0xff]   ;;  %v641_v17 = vld [vmem:[%s807_s1 + $0x78] ss:$12 sps:$4 sm:$0xff]   ;;  %v642_v18 = vld [vmem:[%s807_s1 + $0x94] ss:$12 sps:$4 sm:$0xff]  }
  0x1b   : > { %v651_v19 = vld [vmem:[%s807_s1 + $0x50] ss:$12 sps:$4 sm:$0xff]   ;;  %v646_v21 = vld [vmem:[%s807_s1 + $0xac] ss:$12 sps:$4 sm:$0xff]   ;;  %v652_v22 = vld [vmem:[%s807_s1 + $0x68] ss:$12 sps:$4 sm:$0xff]  }
  0x1c   : > { %385 = vmatpush1.bf16.msra.mxu0 %v629_v6  ;;  %v644_v20 = vld [vmem:[%s807_s1 + $0x90] ss:$12 sps:$4 sm:$0xff]   ;;  %v648_v23 = vld [vmem:[%s807_s1 + $0xa8] ss:$12 sps:$4 sm:$0xff]   ;;  %v203_v24 = vld [vmem:[#allocation2] sm:$0xff]  ;;  %v240_v30 = vshrl.u32 %v239_v29, 7 }
  0x1d   : > { %386 = vmatprep.subr.bf16.mxu0 %v630_v7  ;;  %594 = vmatpush3.bf16.msra.mxu1 %v649_v13  ;;  %v653_v25 = vld [vmem:[%s807_s1 + $0x80] ss:$12 sps:$4 sm:$0xff]   ;;  %v204_v26 = vpack.c.bf16 %v203_v24, %v203_v24  ;;  %v654_v27 = vld [vmem:[%s807_s1 + $0x98] ss:$12 sps:$4 sm:$0xff]   ;;  %v655_v28 = vld [vmem:[%s807_s1 + $0xb0] ss:$12 sps:$4 sm:$0xff]  }
  0x1e   : > { %595 = vmatprep.subr.bf16.mxu1 %v675_v3  ;;  %v241_v31 = vsub.s32 0, %v240_v30  ;;  %v237_v32 = vld [vmem:[%s808_s2] sm:$0x7]  ;;  %v245_v33 = vsub.s32 1, %v240_v30  ;;  %v201_v43 = vld [vmem:[%s719_s25 + $0x8] sm:$0xff]  ;;  %v249_v54 = vsub.s32 2, %v240_v30 }
  0x1f   : > { %v200_v36 = vld [vmem:[%s719_s25] sm:$0xff] }
  0x20   : > { %387 = vmatpush1.bf16.msra.mxu0 %v632_v8  ;;  %v242_v34 = vrot.slane %v237_v32, %v241_v31  ;;  %v246_v35 = vrot.slane %v237_v32, %v245_v33  ;;  %v250_v55 = vrot.slane %v237_v32, %v249_v54 }
  0x21   : > { %388 = vmatprep.subr.bf16.mxu0 %v633_v9  ;;  %596 = vmatpush3.bf16.msra.mxu1 %v650_v16 }
  0x22   : > { %597 = vmatprep.subr.bf16.mxu1 %v675_v3 }
  0x24   : > { %389 = vmatpush1.bf16.msra.mxu0 %v635_v11 }
  0x25   : > { %390 = vmatprep.subr.bf16.mxu0 %v636_v12  ;;  %598 = vmatpush3.bf16.msra.mxu1 %v651_v19 }
  0x26   : > { %599 = vmatprep.subr.bf16.mxu1 %v675_v3 }
  0x28   : > { %391 = vmatpush1.bf16.msra.mxu0 %v638_v14 }
  0x29   : > { %392 = vmatprep.subr.bf16.mxu0 %v639_v15  ;;  %600 = vmatpush3.bf16.msra.mxu1 %v652_v22 }
  0x2a   : > { %601 = vmatprep.subr.bf16.mxu1 %v675_v3 }
  0x2c   : > { %393 = vmatpush1.bf16.msra.mxu0 %v641_v17 }
  0x2d   : > { %394 = vmatprep.subr.bf16.mxu0 %v642_v18  ;;  %602 = vmatpush3.bf16.msra.mxu1 %v653_v25 }
  0x2e   : > { %603 = vmatprep.subr.bf16.mxu1 %v675_v3 }
  0x30   : > { %395 = vmatpush1.bf16.msra.mxu0 %v644_v20 }
  0x31   : > { %396 = vmatprep.subr.bf16.mxu0 %v646_v21  ;;  %604 = vmatpush3.bf16.msra.mxu1 %v654_v27 }
  0x32   : > { %605 = vmatprep.subr.bf16.mxu1 %v675_v3 }
  0x34   : > { %397 = vmatpush1.bf16.msra.mxu0 %v648_v23 }
  0x35   : > { %606 = vmatpush3.bf16.msra.mxu1 %v655_v28 }
  0x37   : > { %415 = vmatmul.mubr.bf16.vlgmr.msra.gmra.mrb[0].mxu0 %v204_v26 }
  0x38   : > { %608 = vmatmul.mubr.bf16.vlgmr.msra.gmra.mrb[0].mxu1 %v204_v26 }
 0x10a   : > { %v416_v37 = vpop.f32.mrb[0].mxu0 }
 0x10b   : > { %v417_v38 = vadd.f32 %v416_v37, %v242_v34  ;;  %v418_v39 = vpop.f32.mrb[1].mxu0  ;;  %v457_v47 = vpop.f32.mrb[0].mxu1 }
 0x10c   : > { %v419_v40 = vadd.f32 %v418_v39, %v246_v35  ;;  %v420_v41 = vpop.f32.mrb[2].mxu0  ;;  %v609_v49 = vpop.f32.mrb[1].mxu1  ;;  %v458_v58 = vadd.f32 %v457_v47, %v250_v55 }
 0x10d   : > { %v463_v42 = vadd.f32 %v417_v38, %v200_v36  ;;  %v421_v44 = vpop.f32.mrb[3].mxu0  ;;  %v460_v50 = vpop.f32.mrb[2].mxu1 }
 0x10e   : > { %v470_v46 = vadd.f32 %v419_v40, %v201_v43  ;;  %v610_v51 = vpop.f32.mrb[3].mxu1 }
 0x10f   : > { %v578_v45 = vmul.f32 -1.442695, %v463_v42 }
 0x110   : > { %v579_v48 = vmul.f32 -1.442695, %v470_v46 }
 0x111   : > { %656 = vpow2.f32 %v578_v45 }
 0x112   : > { %658 = vpow2.f32 %v579_v48 }
 0x11b   : > { %v657_v52 = vpop.eup %656 }
 0x11c   : > { %v467_v53 = vadd.f32 1.0, %v657_v52  ;;  %v659_v56 = vpop.eup %658 }
 0x11d   : > { %v474_v57 = vadd.f32 1.0, %v659_v56 }
 0x11e   : > { %660 = vrcp.f32 %v467_v53 }
 0x11f   : > { %662 = vrcp.f32 %v474_v57 }
 0x128   : > { %v661_v59 = vpop.eup %660 }
 0x129   : > { %v477_v61 = vmul.f32 %v661_v59, %v458_v58  ;;  %v663_v63 = vpop.eup %662 }
 0x12a   : > { %v480_v0 = vsub.f32 1.0, %v663_v63  ;;  %v482_v2 = vmul.f32 %v663_v63, %v203_v24 }
 0x12b   : > { %v478_v62 = vadd.f32 %v477_v61, %v202_v60 }
 0x12d   : > { %664 = vtanh.f32 %v478_v62 }
 0x137   : > { %v665_v1 = vpop.eup %664 }
 0x138   : > { %v481_v3 = vmul.f32 %v665_v1, %v480_v0 }
 0x13a   : > { %v483_v4 = vadd.f32 %v482_v2, %v481_v3 }
 0x13c   : > { %484 = vst [vmem:[#allocation2] sm:$0xff] %v483_v4  ;;  %485 = vst [vmem:[%s714_s22] sm:$0xff] %v483_v4 }
 0x13d   : > { %486 = vst [vmem:[%s810_s4] sm:$0xff] %v483_v4 }
 0x13e PF: > { %s15_s15 = sadd.s32 1, %s672_s15  }
 0x13f   : > { %p12_p5 = scmp.ge.s32.totalorder %s15_s15, 10  }
 0x141   :  { %14 = sbr.rel (!%p12_p5) target bundleno = 1 (0x1), region = 74 }

// kernel: _seq2seq_compute.6
= control target key start
LH: loop header
LB: loop body
LE: loop exit
PB: predicated region body
PF: predicated region fallthrough
CT: control target
= control target key end

     0   :  { %s339_s1 = inlined_call_operand.vmem [shape: bf16[128,128], index: 1, kind: input, shape index: {}]   ;;  %s340_s0 = inlined_call_operand.vmem [shape: f32[64,128], index: 0, kind: input, shape index: {}]   ;;  %s341_s2 = inlined_call_operand.vmem [shape: f32[1,128], index: 2, kind: input, shape index: {}]   ;;  %s342_s3 = inlined_call_operand.vmem [shape: f32[64,128], index: 3, kind: output, shape index: {}]  }
   0x1   :  { %v236_v0 = vld [vmem:[%s339_s1] sm:$0xff]   ;;  %v237_v1 = vld [vmem:[%s339_s1 + $0x8] sm:$0xff]   ;;  %v238_v2 = vld [vmem:[%s339_s1 + $0x10] sm:$0xff]  }
   0x2   :  { %196 = vmatprep.subr.bf16.mxu0 %v236_v0  ;;  %220 = vmatprep.subr.bf16.mxu1 %v236_v0  ;;  %v239_v3 = vld [vmem:[%s339_s1 + $0x18] sm:$0xff]   ;;  %v15_v4 = vld [vmem:[%s340_s0] sm:$0xff]  ;;  %v16_v5 = vld [vmem:[%s340_s0 + $0x8] sm:$0xff] }
   0x3   :  { %197 = vmatpush3.bf16.msra.mxu0 %v236_v0  ;;  %228 = vmatpush3.bf16.msra.mxu1 %v236_v0  ;;  %v19_v6 = vld [vmem:[%s340_s0 + $0x20] sm:$0xff]  ;;  %v23_v7 = vpack.c.bf16 %v16_v5, %v15_v4  ;;  %v20_v8 = vld [vmem:[%s340_s0 + $0x28] sm:$0xff]  ;;  %v242_v12 = vld [vmem:[%s339_s1 + $0x30] sm:$0xff]  }
   0x4   :  { %198 = vmatprep.subr.bf16.mxu0 %v237_v1  ;;  %221 = vmatprep.subr.bf16.mxu1 %v237_v1  ;;  %v25_v9 = vpack.c.bf16 %v20_v8, %v19_v6  ;;  %v240_v10 = vld [vmem:[%s339_s1 + $0x20] sm:$0xff]   ;;  %v241_v11 = vld [vmem:[%s339_s1 + $0x28] sm:$0xff]   ;;  %v243_v13 = vld [vmem:[%s339_s1 + $0x38] sm:$0xff]  }
   0x5   :  { %212 = vmatprep.mubr.bf16.mxu0 %v23_v7  ;;  %v17_v14 = vld [vmem:[%s340_s0 + $0x10] sm:$0xff]  ;;  %v18_v15 = vld [vmem:[%s340_s0 + $0x18] sm:$0xff]  ;;  %v175_v20 = vld [vmem:[%s341_s2] ss:$0 sm:$0xff] }
   0x6   :  { %216 = vmatprep.mubr.bf16.mxu1 %v25_v9  ;;  %v21_v16 = vld [vmem:[%s340_s0 + $0x30] sm:$0xff]  ;;  %v22_v17 = vld [vmem:[%s340_s0 + $0x38] sm:$0xff]  ;;  %v24_v18 = vpack.c.bf16 %v18_v15, %v17_v14 }
   0x7   :  { %199 = vmatpush3.bf16.msra.mxu0 %v237_v1  ;;  %229 = vmatpush3.bf16.msra.mxu1 %v237_v1  ;;  %v26_v19 = vpack.c.bf16 %v22_v17, %v21_v16 }
   0x8   :  { %200 = vmatprep.subr.bf16.mxu0 %v238_v2  ;;  %222 = vmatprep.subr.bf16.mxu1 %v238_v2 }
   0xb   :  { %201 = vmatpush3.bf16.msra.mxu0 %v238_v2  ;;  %230 = vmatpush3.bf16.msra.mxu1 %v238_v2 }
   0xc   :  { %202 = vmatprep.subr.bf16.mxu0 %v239_v3  ;;  %223 = vmatprep.subr.bf16.mxu1 %v239_v3 }
   0xf   :  { %203 = vmatpush3.bf16.msra.mxu0 %v239_v3  ;;  %231 = vmatpush3.bf16.msra.mxu1 %v239_v3 }
  0x10   :  { %204 = vmatprep.subr.bf16.mxu0 %v240_v10  ;;  %224 = vmatprep.subr.bf16.mxu1 %v240_v10 }
  0x13   :  { %205 = vmatpush3.bf16.msra.mxu0 %v240_v10  ;;  %232 = vmatpush3.bf16.msra.mxu1 %v240_v10 }
  0x14   :  { %206 = vmatprep.subr.bf16.mxu0 %v241_v11  ;;  %225 = vmatprep.subr.bf16.mxu1 %v241_v11 }
  0x17   :  { %207 = vmatpush3.bf16.msra.mxu0 %v241_v11  ;;  %233 = vmatpush3.bf16.msra.mxu1 %v241_v11 }
  0x18   :  { %208 = vmatprep.subr.bf16.mxu0 %v242_v12  ;;  %226 = vmatprep.subr.bf16.mxu1 %v242_v12 }
  0x1b   :  { %209 = vmatpush3.bf16.msra.mxu0 %v242_v12  ;;  %234 = vmatpush3.bf16.msra.mxu1 %v242_v12 }
  0x1c   :  { %210 = vmatprep.subr.bf16.mxu0 %v243_v13  ;;  %227 = vmatprep.subr.bf16.mxu1 %v243_v13 }
  0x1f   :  { %211 = vmatpush3.bf16.msra.mxu0 %v243_v13  ;;  %235 = vmatpush3.bf16.msra.mxu1 %v243_v13 }
  0x22   :  { %213 = vmatmul.mubr.bf16.vlgmr.msra.gmra.mrb[0].mxu0 %v24_v18  ;;  %217 = vmatmul.mubr.bf16.vlgmr.msra.gmra.mrb[0].mxu1 %v26_v19 }
  0xf5   :  { %v214_v21 = vpop.f32.mrb[0].mxu0  ;;  %v218_v22 = vpop.f32.mrb[0].mxu1 }
  0xf6   :  { %v141_v23 = vadd.f32 %v214_v21, %v175_v20  ;;  %v157_v24 = vadd.f32 %v218_v22, %v175_v20  ;;  %v132_v25 = vpop.f32.mrb[1].mxu0  ;;  %v148_v26 = vpop.f32.mrb[1].mxu1 }
  0xf7   :  { %v133_v27 = vadd.f32 %v175_v20, %v132_v25  ;;  %v149_v28 = vadd.f32 %v175_v20, %v148_v26  ;;  %v215_v29 = vpop.f32.mrb[2].mxu0  ;;  %v219_v30 = vpop.f32.mrb[2].mxu1 }
  0xf8   :  { %165 = vst [vmem:[%s342_s3 + $0x10] sm:$0xff] %v141_v23  ;;  %169 = vst [vmem:[%s342_s3 + $0x30] sm:$0xff] %v157_v24  ;;  %v144_v31 = vadd.f32 %v215_v29, %v175_v20  ;;  %v160_v32 = vadd.f32 %v219_v30, %v175_v20  ;;  %v135_v33 = vpop.f32.mrb[3].mxu0  ;;  %v151_v34 = vpop.f32.mrb[3].mxu1 }
  0xf9   :  { %163 = vst [vmem:[%s342_s3] sm:$0xff] %v133_v27  ;;  %167 = vst [vmem:[%s342_s3 + $0x20] sm:$0xff] %v149_v28  ;;  %v136_v35 = vadd.f32 %v175_v20, %v135_v33  ;;  %v152_v36 = vadd.f32 %v175_v20, %v151_v34 }
  0xfa   :  { %166 = vst [vmem:[%s342_s3 + $0x18] sm:$0xff] %v144_v31  ;;  %170 = vst [vmem:[%s342_s3 + $0x38] sm:$0xff] %v160_v32 }
  0xfb   :  { %164 = vst [vmem:[%s342_s3 + $0x8] sm:$0xff] %v136_v35  ;;  %168 = vst [vmem:[%s342_s3 + $0x28] sm:$0xff] %v152_v36 }

// kernel: _seq2seq_compute.7
= control target key start
LH: loop header
LB: loop body
LE: loop exit
PB: predicated region body
PF: predicated region fallthrough
CT: control target
= control target key end

     0   :  { %s2694_s0 = inlined_call_operand.vmem [shape: s32[5], index: 0, kind: input, shape index: {}]   ;;  %s2695_s1 = inlined_call_operand.vmem [shape: f32[5,8,128], index: 1, kind: input, shape index: {}]   ;;  %s2696_s2 = inlined_call_operand.vmem [shape: f32[8,128], index: 2, kind: input, shape index: {}]   ;;  %s2697_s3 = inlined_call_operand.vmem [shape: f32[8,8,128], index: 3, kind: input, shape index: {}]   ;;  %s2698_s4 = inlined_call_operand.vmem [shape: f32[8,8,128], index: 4, kind: input, shape index: {}]   ;;  %s2699_s5 = inlined_call_operand.vmem [shape: bf16[128,128], index: 5, kind: input, shape index: {}]   ;;  %s2700_s6 = inlined_call_operand.vmem [shape: f32[1,128], index: 6, kind: input, shape index: {}]   ;;  %s2701_s7 = inlined_call_operand.vmem [shape: bf16[256,384], index: 7, kind: input, shape index: {}]   ;;  %s2702_s8 = inlined_call_operand.vmem [shape: bf16[128,384], index: 8, kind: input, shape index: {}]   ;;  %s2703_s9 = inlined_call_operand.vmem [shape: f32[1,384], index: 9, kind: input, shape index: {}]   ;;  %s2704_s10 = inlined_call_operand.vmem [shape: f32[1,384], index: 10, kind: input, shape index: {}]   ;;  %s2705_s11 = inlined_call_operand.vmem [shape: bf16[384,128], index: 11, kind: input, shape index: {}]   ;;  %s2706_s12 = inlined_call_operand.vmem [shape: f32[1,128], index: 12, kind: input, shape index: {}]   ;;  %s2707_s13 = inlined_call_operand.vmem [shape: f32[5,8,128], index: 13, kind: output, shape index: {}]  }
   0x1   :  { %s18_s27 = sshll.u32 %s2694_s0, 4  ;;  %s19_s27 = int_to_ptr.vmem [resolvable:$true] %s18_s27 }
   0x2   :  { %s2145_s28 = scalar_lea.vmem %s19_s27, 16  ;;  %p2150_p1 = scmp.lt.s32.totalorder %s19_s27, %s19_s27 }
   0x3   :  { %p2146_p0 = scmp.ne.s32.totalorder %s19_s27, %s2145_s28  ;;  %p2151_p2 = scmp.lt.s32.totalorder %s2145_s28, %s2145_s28 }
   0x5   :  { %p2152_p3 = por %p2151_p2, %p2150_p1 }
   0x7   :  { %p2153_p4 = pnand %p2152_p3, %p2146_p0 }
   0x9   :  { %2156 = shalt.err (!%p2153_p4)  }
   0xa   :  { %s2167_s29 = smov [#allocation5]  }
   0xb   :  { %21 = dma.vmem_to_smem %s19_s27, 16, %s2167_s29, [#allocation4] }
   0xc   :  { %2161 = dma.done.wait [#allocation4], 16 }
   0xd   :  { %2162 = vsyncadd [#allocation4], 4294967280 }
   0xe   :  { %23 = sfence }
   0xf   :  { %s2245_s30 = smov 0  }
  0x10 LB: > { %s2251_s0 = sadd.s32 4294967295, %s2165_s30   ;;  %p1706_p5 = scmp.ge.s32.totalorder %s2165_s30, 1  ;;  %s2165_s30 = sphi %s2245_s30, %s29_s30  }
  0x11   : > { %p368_p6 = scmp.lt.s32.totalorder %s2165_s30, 6 }
  0x13   : > { %p369_p7 = pnand %p1706_p5, %p368_p6 }
  0x14   : > { %p408_p8 = scmp.lt.s32.totalorder (!%p369_p7), %s2251_s0, 4  ;;  %p1709_p9 = scmp.ne.s32.totalorder (!%p369_p7), %s2251_s0, 0 }
  0x15   : > { %372 = sbr.rel (%p369_p7) target bundleno = 1032 (0x408), region = 68 }
  0x1c   : > { %s409_s14 = scalar_select %p408_p8, %s2251_s0, 4 }
  0x1d   : > { %420 = sbr.rel (%p1709_p9) target bundleno = 36 (0x24), region = 72  ;;  %v421_v0 = vld [vmem:[%s2696_s2] sm:$0xff] (!%p1709_p9)  ;;  %v2168_v1 = vmov (!%p1709_p9), 0.0  }
  0x1e   : > { %s1707_s15 = sshll.u32 %s409_s14, 3  ;;  %422 = vst [vmem:[#allocation2] sm:$0xff] (!%p1709_p9), %v421_v0  ;;  %423 = vst [vmem:[#allocation3] sm:$0xff] (!%p1709_p9), %v2168_v1 }
  0x1f   : > { %s2260_s18 = scalar_lea.vmem %s2695_s1, %s1707_s15  ;;  %s2265_s21 = scalar_lea.vmem %s2707_s13, %s1707_s15 }
  0x24 PF: > { %v1972_v2 = vld [vmem:[%s2699_s5] sm:$0xff]   ;;  %v2169_v3 = vmov 0.0   ;;  %v1973_v4 = vld [vmem:[%s2699_s5 + $0x8] sm:$0xff]   ;;  %vm2170_vm0 = vmmov 0   ;;  %v1974_v5 = vld [vmem:[%s2699_s5 + $0x10] sm:$0xff]   ;;  %s424_s14 = sld [smem:[#allocation5 + %s2251_s0]] }
  0x25   : > { %1891 = vmatprep.subr.bf16.mxu0 %v2169_v3  ;;  %1907 = vmatprep.mubr.msk.bf16.mxu0 %vm2170_vm0, %v2169_v3  ;;  %v1975_v6 = vld [vmem:[%s2699_s5 + $0x18] sm:$0xff]   ;;  %v1976_v7 = vld [vmem:[%s2699_s5 + $0x20] sm:$0xff]   ;;  %v1977_v8 = vld [vmem:[%s2699_s5 + $0x28] sm:$0xff]  }
  0x26   : > { %1892 = vmatpush3.bf16.msra.mxu0 %v1972_v2  ;;  %v1978_v9 = vld [vmem:[%s2699_s5 + $0x30] sm:$0xff]   ;;  %v1979_v10 = vld [vmem:[%s2699_s5 + $0x38] sm:$0xff]   ;;  %v436_v11 = vld [vmem:[#allocation2] sm:$0xff] }
  0x27   : > { %1893 = vmatprep.subr.bf16.mxu0 %v2169_v3  ;;  %v2305_v12 = vpack.c.bf16 %v436_v11, %v436_v11  ;;  %v544_v13 = vld [vmem:[%s2698_s4 + $0x10] sm:$0xff]  ;;  %v542_v14 = vld [vmem:[%s2698_s4] sm:$0xff]  ;;  %v545_v15 = vld [vmem:[%s2698_s4 + $0x18] sm:$0xff] }
  0x28   : > { %v543_v16 = vld [vmem:[%s2698_s4 + $0x8] sm:$0xff]  ;;  %v546_v26 = vld [vmem:[%s2698_s4 + $0x20] sm:$0xff]  ;;  %v549_v29 = vld [vmem:[%s2698_s4 + $0x38] sm:$0xff] }
  0x29   : > { %v547_v24 = vld [vmem:[%s2698_s4 + $0x28] sm:$0xff]  ;;  %v548_v30 = vld [vmem:[%s2698_s4 + $0x30] sm:$0xff]  ;;  %v1718_v33 = vld [vmem:[%s2700_s6] ss:$0 sm:$0xff] }
  0x2a   : > { %1894 = vmatpush3.bf16.msra.mxu0 %v1973_v4  ;;  %v1980_v50 = vld [vmem:[%s2701_s7 + $0x4] ss:$12 sps:$4 sm:$0xff]   ;;  %v1982_v51 = vld [vmem:[%s2701_s7] ss:$12 sps:$4 sm:$0xff]   ;;  %v1983_v52 = vld [vmem:[%s2701_s7 + $0x1c] ss:$12 sps:$4 sm:$0xff]  }
  0x2b   : > { %1895 = vmatprep.subr.bf16.mxu0 %v2169_v3  ;;  %1006 = vmatprep.subr.bf16.mxu1 %v1980_v50  ;;  %v1985_v53 = vld [vmem:[%s2701_s7 + $0x18] ss:$12 sps:$4 sm:$0xff]   ;;  %v1986_v54 = vld [vmem:[%s2701_s7 + $0x34] ss:$12 sps:$4 sm:$0xff]   ;;  %v1988_v55 = vld [vmem:[%s2701_s7 + $0x30] ss:$12 sps:$4 sm:$0xff]  }
  0x2c   : > { %1007 = vmatpush1.bf16.msra.mxu1 %v1982_v51  ;;  %v1989_v56 = vld [vmem:[%s2701_s7 + $0x4c] ss:$12 sps:$4 sm:$0xff]   ;;  %v1991_v57 = vld [vmem:[%s2701_s7 + $0x48] ss:$12 sps:$4 sm:$0xff]   ;;  %v1992_v58 = vld [vmem:[%s2701_s7 + $0x64] ss:$12 sps:$4 sm:$0xff]  }
  0x2d   : > { %1008 = vmatprep.subr.bf16.mxu1 %v1983_v52  ;;  %v1994_v59 = vld [vmem:[%s2701_s7 + $0x60] ss:$12 sps:$4 sm:$0xff]   ;;  %v1995_v60 = vld [vmem:[%s2701_s7 + $0x7c] ss:$12 sps:$4 sm:$0xff]   ;;  %v1997_v61 = vld [vmem:[%s2701_s7 + $0x78] ss:$12 sps:$4 sm:$0xff]  }
  0x2e   : > { %1896 = vmatpush3.bf16.msra.mxu0 %v1974_v5  ;;  %v1998_v62 = vld [vmem:[%s2701_s7 + $0x94] ss:$12 sps:$4 sm:$0xff]   ;;  %v2000_v63 = vld [vmem:[%s2701_s7 + $0x90] ss:$12 sps:$4 sm:$0xff]   ;;  %v2001_v0 = vld [vmem:[%s2701_s7 + $0xac] ss:$12 sps:$4 sm:$0xff]  }
  0x2f   : > { %1897 = vmatprep.subr.bf16.mxu0 %v2169_v3  ;;  %v2003_v1 = vld [vmem:[%s2701_s7 + $0xa8] ss:$12 sps:$4 sm:$0xff]   ;;  %v2004_v2 = vld [vmem:[%s2701_s7 + $0xc4] ss:$12 sps:$4 sm:$0xff]   ;;  %p425_p10 = scmp.gt.s32.totalorder %s424_s14, 0 }
  0x30   : > { %1009 = vmatpush1.bf16.msra.mxu1 %v1985_v53  ;;  %v2006_v4 = vld [vmem:[%s2701_s7 + $0xc8] ss:$12 sps:$4 sm:$0xff]   ;;  %v2012_v11 = vld [vmem:[%s2701_s7 + $0xd8] ss:$12 sps:$4 sm:$0xff]  }
  0x31   : > { %1010 = vmatprep.subr.bf16.mxu1 %v1986_v54  ;;  %v2008_v5 = vld [vmem:[%s2701_s7 + $0x8] ss:$12 sps:$4 sm:$0xff]   ;;  %s426_s15 = scalar_select %p425_p10, 1, 0 }
  0x32   : > { %1898 = vmatpush3.bf16.msra.mxu0 %v1975_v6  ;;  %v2007_v6 = vld [vmem:[%s2701_s7 + $0xc0] ss:$12 sps:$4 sm:$0xff]  }
  0x33   : > { %1899 = vmatprep.subr.bf16.mxu0 %v2169_v3  ;;  %s427_s16 = scvt.s32.f32 %s426_s15 }
  0x34   : > { %1011 = vmatpush1.bf16.msra.mxu1 %v1988_v55 }
  0x35   : > { %1012 = vmatprep.subr.bf16.mxu1 %v1989_v56  ;;  %s431_s24 = ssub.f32 1.0, %s427_s16 }
  0x36   : > { %1900 = vmatpush3.bf16.msra.mxu0 %v1976_v7  ;;  %v2011_v7 = vld [vmem:[%s2701_s7 + $0xe0] ss:$12 sps:$4 sm:$0xff]  }
  0x37   : > { %1901 = vmatprep.subr.bf16.mxu0 %v2169_v3 }
  0x38   : > { %1013 = vmatpush1.bf16.msra.mxu1 %v1991_v57 }
  0x39   : > { %1014 = vmatprep.subr.bf16.mxu1 %v1992_v58 }
  0x3a   : > { %1902 = vmatpush3.bf16.msra.mxu0 %v1977_v8  ;;  %v2009_v8 = vld [vmem:[%s2701_s7 + $0xdc] ss:$12 sps:$4 sm:$0xff]  }
  0x3b   : > { %1903 = vmatprep.subr.bf16.mxu0 %v2169_v3 }
  0x3c   : > { %1015 = vmatpush1.bf16.msra.mxu1 %v1994_v59 }
  0x3d   : > { %1016 = vmatprep.subr.bf16.mxu1 %v1995_v60 }
  0x3e   : > { %1904 = vmatpush3.bf16.msra.mxu0 %v1978_v9  ;;  %v2013_v9 = vld [vmem:[%s2701_s7 + $0x20] ss:$12 sps:$4 sm:$0xff]  }
  0x3f   : > { %1905 = vmatprep.subr.bf16.mxu0 %v2169_v3 }
  0x40   : > { %1017 = vmatpush1.bf16.msra.mxu1 %v1997_v61 }
  0x41   : > { %1018 = vmatprep.subr.bf16.mxu1 %v1998_v62 }
  0x42   : > { %1906 = vmatpush3.bf16.msra.mxu0 %v1979_v10  ;;  %v2016_v10 = vld [vmem:[%s2701_s7 + $0xf8] ss:$12 sps:$4 sm:$0xff]  }
  0x43   : > { %1829 = vmatprep.subr.bf16.mxu0 %v2006_v4 }
  0x44   : > { %1019 = vmatpush1.bf16.msra.mxu1 %v2000_v63 }
  0x45   : > { %1908 = vmatmul.mubr.bf16.vlgmr.msra.gmra.mrb[0].mxu0 %v2305_v12  ;;  %1020 = vmatprep.subr.bf16.mxu1 %v2001_v0 }
  0x46   : > { %1830 = vmatpush3.bf16.msra.mxu0 %v2008_v5 }
  0x47   : > { %1831 = vmatprep.subr.bf16.mxu0 %v2011_v7 }
  0x48   : > { %1021 = vmatpush1.bf16.msra.mxu1 %v2003_v1 }
  0x49   : > { %1022 = vmatprep.subr.bf16.mxu1 %v2004_v2 }
  0x4a   : > { %1832 = vmatpush3.bf16.msra.mxu0 %v2013_v9 }
  0x4b   : > { %1833 = vmatprep.subr.bf16.mxu0 %v2016_v10 }
  0x4c   : > { %1023 = vmatpush1.bf16.msra.mxu1 %v2007_v6 }
  0x4d   : > { %1024 = vmatprep.subr.bf16.mxu1 %v2009_v8 }
  0x50   : > { %1025 = vmatpush1.bf16.msra.mxu1 %v2012_v11 }
 0x118   : > { %v536_v17 = vpop.f32.mrb[0].mxu0 }
 0x119   : > { %v1909_v18 = vpop.f32.mrb[1].mxu0  ;;  %v552_v19 = vadd.f32 %v544_v13, %v536_v17  ;;  %v550_v20 = vadd.f32 %v542_v14, %v536_v17  ;;  %v553_v21 = vadd.f32 %v545_v15, %v536_v17  ;;  %v551_v23 = vadd.f32 %v543_v16, %v536_v17  ;;  %v2014_v13 = vld [vmem:[%s2701_s7 + $0xf4] ss:$12 sps:$4 sm:$0xff]   ;;  %v2018_v14 = vld [vmem:[%s2701_s7 + $0x38] ss:$12 sps:$4 sm:$0xff]  }
 0x11a   : > { %v539_v22 = vpop.f32.mrb[2].mxu0  ;;  %v555_v27 = vadd.f32 %v547_v24, %v536_v17  ;;  %v554_v28 = vadd.f32 %v546_v26, %v536_v17  ;;  %v557_v31 = vadd.f32 %v549_v29, %v536_v17  ;;  %v556_v32 = vadd.f32 %v548_v30, %v536_v17  ;;  %v2021_v15 = vld [vmem:[%s2701_s7 + $0x110] ss:$12 sps:$4 sm:$0xff]   ;;  %1026 = vmatprep.subr.bf16.mxu1 %v2014_v13  ;;  %v2019_v17 = vld [vmem:[%s2701_s7 + $0x10c] ss:$12 sps:$4 sm:$0xff]  }
 0x11b   : > { %v1910_v25 = vpop.f32.mrb[3].mxu0  ;;  %2100 = vtanh.f32 %v552_v19  ;;  %v2017_v16 = vld [vmem:[%s2701_s7 + $0xf0] ss:$12 sps:$4 sm:$0xff]   ;;  %1834 = vmatpush3.bf16.msra.mxu0 %v2018_v14  ;;  %v2026_v19 = vld [vmem:[%s2701_s7 + $0x128] ss:$12 sps:$4 sm:$0xff]  }
 0x11c   : > { %2102 = vtanh.f32 %v550_v20  ;;  %v2023_v18 = vld [vmem:[%s2701_s7 + $0x50] ss:$12 sps:$4 sm:$0xff]   ;;  %1835 = vmatprep.subr.bf16.mxu0 %v2021_v15  ;;  %1027 = vmatpush1.bf16.msra.mxu1 %v2017_v16  ;;  %v2022_v20 = vld [vmem:[%s2701_s7 + $0x108] ss:$12 sps:$4 sm:$0xff]   ;;  %v2027_v24 = vld [vmem:[%s2701_s7 + $0x120] ss:$12 sps:$4 sm:$0xff]  }
 0x11d   : > { %2104 = vtanh.f32 %v553_v21  ;;  %1028 = vmatprep.subr.bf16.mxu1 %v2019_v17  ;;  %v2024_v21 = vld [vmem:[%s2701_s7 + $0x124] ss:$12 sps:$4 sm:$0xff]   ;;  %v2028_v22 = vld [vmem:[%s2701_s7 + $0x68] ss:$12 sps:$4 sm:$0xff]   ;;  %v2033_v26 = vld [vmem:[%s2701_s7 + $0x80] ss:$12 sps:$4 sm:$0xff]  }
 0x11e   : > { %2106 = vtanh.f32 %v551_v23  ;;  %v2031_v23 = vld [vmem:[%s2701_s7 + $0x140] ss:$12 sps:$4 sm:$0xff]   ;;  %v2029_v25 = vld [vmem:[%s2701_s7 + $0x13c] ss:$12 sps:$4 sm:$0xff]   ;;  %v2038_v30 = vld [vmem:[%s2701_s7 + $0x98] ss:$12 sps:$4 sm:$0xff]  }
 0x11f   : > { %2108 = vtanh.f32 %v555_v27  ;;  %1836 = vmatpush3.bf16.msra.mxu0 %v2023_v18  ;;  %v2036_v27 = vld [vmem:[%s2701_s7 + $0x158] ss:$12 sps:$4 sm:$0xff]   ;;  %v2034_v29 = vld [vmem:[%s2701_s7 + $0x154] ss:$12 sps:$4 sm:$0xff]  }
 0x120   : > { %2110 = vtanh.f32 %v554_v28  ;;  %1837 = vmatprep.subr.bf16.mxu0 %v2026_v19  ;;  %1029 = vmatpush1.bf16.msra.mxu1 %v2022_v20  ;;  %v2032_v28 = vld [vmem:[%s2701_s7 + $0x138] ss:$12 sps:$4 sm:$0xff]  }
 0x121   : > { %2112 = vtanh.f32 %v557_v31  ;;  %1030 = vmatprep.subr.bf16.mxu1 %v2024_v21  ;;  %v2041_v31 = vld [vmem:[%s2701_s7 + $0x170] ss:$12 sps:$4 sm:$0xff]  }
 0x122   : > { %2114 = vtanh.f32 %v556_v32  ;;  %v2037_v32 = vld [vmem:[%s2701_s7 + $0x150] ss:$12 sps:$4 sm:$0xff]  }
 0x123   : > { %1838 = vmatpush3.bf16.msra.mxu0 %v2028_v22  ;;  %v644_v22 = vld [vmem:[%s2697_s3] sm:$0xff] }
 0x124   : > { %1839 = vmatprep.subr.bf16.mxu0 %v2031_v23  ;;  %1031 = vmatpush1.bf16.msra.mxu1 %v2027_v24  ;;  %v645_v23 = vld [vmem:[%s2697_s3 + $0x8] sm:$0xff] }
 0x125   : > { %v2101_v34 = vpop.eup %2100  ;;  %1032 = vmatprep.subr.bf16.mxu1 %v2029_v25 }
 0x126   : > { %v2103_v35 = vpop.eup %2102  ;;  %v575_v36 = vmul.f32 %v2101_v34, %v1718_v33  ;;  %v2043_v34 = vld [vmem:[%s2701_s7 + $0xb0] ss:$12 sps:$4 sm:$0xff]  }
 0x127   : > { %v2105_v37 = vpop.eup %2104  ;;  %v573_v38 = vmul.f32 %v2103_v35, %v1718_v33  ;;  %1840 = vmatpush3.bf16.msra.mxu0 %v2033_v26  ;;  %v2042_v35 = vld [vmem:[%s2701_s7 + $0x168] ss:$12 sps:$4 sm:$0xff]  }
 0x128   : > { %v2107_v39 = vpop.eup %2106  ;;  %585 = vadd.xlane.f32.xlu1 %v575_v36  ;;  %v576_v40 = vmul.f32 %v2105_v37, %v1718_v33  ;;  %1841 = vmatprep.subr.bf16.mxu0 %v2036_v27  ;;  %v2046_v36 = vld [vmem:[%s2702_s8 + $0x4] ss:$12 sps:$4 sm:$0xff]  }
 0x129   : > { %581 = vadd.xlane.f32.xlu0 %v573_v38  ;;  %v2109_v41 = vpop.eup %2108  ;;  %v574_v42 = vmul.f32 %v2107_v39, %v1718_v33  ;;  %1033 = vmatpush1.bf16.msra.mxu1 %v2032_v28  ;;  %v646_v27 = vld [vmem:[%s2697_s3 + $0x10] sm:$0xff] }
 0x12a   : > { %v2111_v43 = vpop.eup %2110  ;;  %v578_v44 = vmul.f32 %v2109_v41, %v1718_v33  ;;  %1034 = vmatprep.subr.bf16.mxu1 %v2034_v29 }
 0x12b   : > { %v2113_v45 = vpop.eup %2112  ;;  %v577_v46 = vmul.f32 %v2111_v43, %v1718_v33  ;;  %1842 = vmatpush3.bf16.msra.mxu0 %v2038_v30 }
 0x12c   : > { %587 = vadd.xlane.f32.xlu1 %v576_v40  ;;  %v2115_v47 = vpop.eup %2114  ;;  %v580_v48 = vmul.f32 %v2113_v45, %v1718_v33  ;;  %1843 = vmatprep.subr.bf16.mxu0 %v2041_v31  ;;  %v647_v31 = vld [vmem:[%s2697_s3 + $0x18] sm:$0xff] }
 0x12d   : > { %583 = vadd.xlane.f32.xlu0 %v574_v42  ;;  %v579_v49 = vmul.f32 %v2115_v47, %v1718_v33  ;;  %v2039_v33 = vld [vmem:[%s2701_s7 + $0x16c] ss:$12 sps:$4 sm:$0xff]   ;;  %1035 = vmatpush1.bf16.msra.mxu1 %v2037_v32 }
 0x12e   : > { %1036 = vmatprep.subr.bf16.mxu1 %v2039_v33 }
 0x12f   : > { %1844 = vmatpush3.bf16.msra.mxu0 %v2043_v34 }
 0x130   : > { %591 = vadd.xlane.f32.xlu1 %v578_v44  ;;  %1911 = vmatprep.subr.bf16.mxu0 %v2169_v3 }
 0x131   : > { %589 = vadd.xlane.f32.xlu0 %v577_v46  ;;  %1037 = vmatpush1.bf16.msra.mxu1 %v2042_v35  ;;  %v648_v35 = vld [vmem:[%s2697_s3 + $0x20] sm:$0xff] }
 0x132   : > { %1264 = vmatprep.subr.bf16.mxu1 %v2046_v36  ;;  %v429_v36 = vstv %s427_s16 }
 0x134   : > { %595 = vadd.xlane.f32.xlu1 %v580_v48 }
 0x135   : > { %593 = vadd.xlane.f32.xlu0 %v579_v49 }
 0x1b5   : > { %v586_v37 = vpop.xlane.xlu1 %585 }
 0x1b6   : > { %v582_v38 = vpop.xlane.xlu0 %581 }
 0x1b9   : > { %v588_v39 = vpop.xlane.xlu1 %587 }
 0x1ba   : > { %v584_v40 = vpop.xlane.xlu0 %583 }
 0x1bd   : > { %v592_v41 = vpop.xlane.xlu1 %591 }
 0x1be   : > { %v590_v42 = vpop.xlane.xlu0 %589  ;;  %v598_v43 = vmax.f32 %v584_v40, %v592_v41 }
 0x1bf   : > { %v597_v44 = vmax.f32 %v582_v38, %v590_v42 }
 0x1c1   : > { %v596_v45 = vpop.xlane.xlu1 %595  ;;  %v601_v49 = vmax.f32 %v597_v44, %v598_v43  ;;  %v649_v43 = vld [vmem:[%s2697_s3 + $0x28] sm:$0xff] }
 0x1c2   : > { %v600_v46 = vmax.f32 %v588_v39, %v596_v45  ;;  %v594_v47 = vpop.xlane.xlu0 %593 }
 0x1c3   : > { %v599_v48 = vmax.f32 %v586_v37, %v594_v47 }
 0x1c5   : > { %v602_v50 = vmax.f32 %v599_v48, %v600_v46 }
 0x1c7   : > { %v603_v51 = vmax.f32 %v601_v49, %v602_v50 }
 0x1c9   : > { %v604_v52 = vsub.f32 %v582_v38, %v603_v51  ;;  %v605_v53 = vsub.f32 %v584_v40, %v603_v51  ;;  %v606_v54 = vsub.f32 %v586_v37, %v603_v51  ;;  %v607_v55 = vsub.f32 %v588_v39, %v603_v51  ;;  %v428_v40 = vld [vmem:[%s2260_s18] sm:$0xff] }
 0x1ca   : > { %v608_v58 = vsub.f32 %v590_v42, %v603_v51  ;;  %v609_v60 = vsub.f32 %v592_v41, %v603_v51  ;;  %v610_v62 = vsub.f32 %v594_v47, %v603_v51  ;;  %v611_v0 = vsub.f32 %v596_v45, %v603_v51  ;;  %v432_v41 = vld [vmem:[#allocation3] sm:$0xff]  ;;  %v650_v47 = vld [vmem:[%s2697_s3 + $0x30] sm:$0xff] }
 0x1cb   : > { %v612_v56 = vmul.f32 1.442695, %v604_v52  ;;  %v614_v57 = vmul.f32 1.442695, %v605_v53  ;;  %v616_v59 = vmul.f32 1.442695, %v606_v54  ;;  %v433_v42 = vstv %s431_s24 }
 0x1cc   : > { %v618_v61 = vmul.f32 1.442695, %v607_v55  ;;  %v620_v63 = vmul.f32 1.442695, %v608_v58  ;;  %v622_v1 = vmul.f32 1.442695, %v609_v60  ;;  %v430_v48 = vmul.f32 %v429_v36, %v428_v40 }
 0x1cd   : > { %2116 = vpow2.f32 %v612_v56  ;;  %v624_v2 = vmul.f32 1.442695, %v610_v62  ;;  %v626_v4 = vmul.f32 1.442695, %v611_v0  ;;  %v434_v49 = vmul.f32 %v433_v42, %v432_v41  ;;  %v651_v53 = vld [vmem:[%s2697_s3 + $0x38] sm:$0xff]  ;;  %v2089_v36 = vld [vmem:[%s2705_s11 + $0x20] sm:$0xff]  }
 0x1ce   : > { %2118 = vpow2.f32 %v614_v57  ;;  %v2044_v62 = vld [vmem:[%s2702_s8] ss:$12 sps:$4 sm:$0xff]   ;;  %v2050_v0 = vld [vmem:[%s2702_s8 + $0x1c] ss:$12 sps:$4 sm:$0xff]   ;;  %v2094_v40 = vld [vmem:[%s2705_s11 + $0x70] sm:$0xff]  }
 0x1cf   : > { %2120 = vpow2.f32 %v616_v59  ;;  %v435_v56 = vadd.f32 %v434_v49, %v430_v48  ;;  %v2093_v41 = vld [vmem:[%s2705_s11 + $0xa8] sm:$0xff]   ;;  %v2095_v42 = vld [vmem:[%s2705_s11 + $0x30] sm:$0xff]  }
 0x1d0   : > { %2122 = vpow2.f32 %v618_v61 }
 0x1d1   : > { %2124 = vpow2.f32 %v620_v63  ;;  %v2509_v60 = vpack.c.bf16 %v435_v56, %v435_v56  ;;  %v2047_v63 = vld [vmem:[%s2702_s8 + $0x8] ss:$12 sps:$4 sm:$0xff]  }
 0x1d2   : > { %2126 = vpow2.f32 %v622_v1  ;;  %v2048_v1 = vld [vmem:[%s2702_s8 + $0x18] ss:$12 sps:$4 sm:$0xff]  }
 0x1d3   : > { %2128 = vpow2.f32 %v624_v2  ;;  %v2051_v2 = vld [vmem:[%s2702_s8 + $0x20] ss:$12 sps:$4 sm:$0xff]  }
 0x1d4   : > { %2130 = vpow2.f32 %v626_v4  ;;  %v2054_v4 = vld [vmem:[%s2702_s8 + $0x34] ss:$12 sps:$4 sm:$0xff]  }
 0x1d7   : > { %v2117_v5 = vpop.eup %2116 }
 0x1d8   : > { %v2119_v6 = vpop.eup %2118 }
 0x1d9   : > { %v628_v7 = vadd.f32 %v2119_v6, %v2117_v5  ;;  %v2121_v8 = vpop.eup %2120 }
 0x1da   : > { %v2123_v10 = vpop.eup %2122 }
 0x1db   : > { %v629_v9 = vadd.f32 %v2121_v8, %v628_v7  ;;  %v2125_v13 = vpop.eup %2124  ;;  %v2055_v7 = vld [vmem:[%s2702_s8 + $0x38] ss:$12 sps:$4 sm:$0xff]  }
 0x1dc   : > { %v2127_v15 = vpop.eup %2126 }
 0x1dd   : > { %v630_v11 = vadd.f32 %v2123_v10, %v629_v9  ;;  %v2129_v17 = vpop.eup %2128  ;;  %v2056_v9 = vld [vmem:[%s2702_s8 + $0x48] ss:$12 sps:$4 sm:$0xff]  }
 0x1de   : > { %v2131_v19 = vpop.eup %2130 }
 0x1df   : > { %v631_v14 = vadd.f32 %v2125_v13, %v630_v11  ;;  %v2062_v11 = vld [vmem:[%s2702_s8 + $0x64] ss:$12 sps:$4 sm:$0xff]  }
 0x1e1   : > { %v632_v16 = vadd.f32 %v2127_v15, %v631_v14  ;;  %v2063_v14 = vld [vmem:[%s2702_s8 + $0x68] ss:$12 sps:$4 sm:$0xff]  }
 0x1e3   : > { %v633_v18 = vadd.f32 %v2129_v17, %v632_v16  ;;  %v2064_v16 = vld [vmem:[%s2702_s8 + $0x78] ss:$12 sps:$4 sm:$0xff]  }
 0x1e5   : > { %v634_v20 = vadd.f32 %v2131_v19, %v633_v18  ;;  %v2070_v18 = vld [vmem:[%s2702_s8 + $0x94] ss:$12 sps:$4 sm:$0xff]  }
 0x1e7   : > { %2132 = vrcp.f32 %v634_v20  ;;  %v2071_v20 = vld [vmem:[%s2702_s8 + $0x98] ss:$12 sps:$4 sm:$0xff]  }
 0x1f1   : > { %v2133_v21 = vpop.eup %2132 }
 0x1f2   : > { %v636_v24 = vmul.f32 %v2133_v21, %v2117_v5  ;;  %v637_v25 = vmul.f32 %v2133_v21, %v2119_v6  ;;  %v638_v26 = vmul.f32 %v2133_v21, %v2121_v8  ;;  %v639_v28 = vmul.f32 %v2133_v21, %v2123_v10  ;;  %v2052_v6 = vld [vmem:[%s2702_s8 + $0x30] ss:$12 sps:$4 sm:$0xff]   ;;  %v2058_v8 = vld [vmem:[%s2702_s8 + $0x4c] ss:$12 sps:$4 sm:$0xff]  }
 0x1f3   : > { %v640_v32 = vmul.f32 %v2133_v21, %v2125_v13  ;;  %v641_v37 = vmul.f32 %v2133_v21, %v2127_v15  ;;  %v642_v44 = vmul.f32 %v2133_v21, %v2129_v17  ;;  %v643_v50 = vmul.f32 %v2133_v21, %v2131_v19  ;;  %v2059_v10 = vld [vmem:[%s2702_s8 + $0x50] ss:$12 sps:$4 sm:$0xff]   ;;  %v2060_v13 = vld [vmem:[%s2702_s8 + $0x60] ss:$12 sps:$4 sm:$0xff]  }
 0x1f4   : > { %v652_v29 = vmul.f32 %v644_v22, %v636_v24  ;;  %v653_v30 = vmul.f32 %v645_v23, %v637_v25  ;;  %v654_v33 = vmul.f32 %v646_v27, %v638_v26  ;;  %v655_v38 = vmul.f32 %v647_v31, %v639_v28  ;;  %v2066_v15 = vld [vmem:[%s2702_s8 + $0x7c] ss:$12 sps:$4 sm:$0xff]   ;;  %v2067_v17 = vld [vmem:[%s2702_s8 + $0x80] ss:$12 sps:$4 sm:$0xff]   ;;  %v2084_v31 = vld [vmem:[%s2705_s11 + $0x90] sm:$0xff]  }
 0x1f5   : > { %v656_v45 = vmul.f32 %v648_v35, %v640_v32  ;;  %v657_v51 = vmul.f32 %v649_v43, %v641_v37  ;;  %v658_v54 = vmul.f32 %v650_v47, %v642_v44  ;;  %v659_v57 = vmul.f32 %v651_v53, %v643_v50  ;;  %v2068_v19 = vld [vmem:[%s2702_s8 + $0x90] ss:$12 sps:$4 sm:$0xff]   ;;  %v2074_v21 = vld [vmem:[%s2702_s8 + $0xac] ss:$12 sps:$4 sm:$0xff]   ;;  %v2072_v22 = vld [vmem:[%s2702_s8 + $0xa8] ss:$12 sps:$4 sm:$0xff]  }
 0x1f6   : > { %v660_v34 = vadd.f32 %v653_v30, %v652_v29  ;;  %v2171_v5 = vmov 0   ;;  %v2075_v23 = vld [vmem:[%s2702_s8 + $0xb0] ss:$12 sps:$4 sm:$0xff]   ;;  %v2076_v24 = vld [vmem:[%s2705_s11 + $0x40] sm:$0xff]   ;;  %v2080_v27 = vld [vmem:[%s2705_s11 + $0x8] sm:$0xff]  }
 0x1f7   : > { %v2077_v25 = vld [vmem:[%s2705_s11] sm:$0xff]   ;;  %v2081_v28 = vld [vmem:[%s2705_s11 + $0x88] sm:$0xff]   ;;  %v2082_v29 = vld [vmem:[%s2705_s11 + $0x50] sm:$0xff]  }
 0x1f8   : > { %v661_v39 = vadd.f32 %v660_v34, %v654_v33  ;;  %v2078_v26 = vld [vmem:[%s2705_s11 + $0x80] sm:$0xff]   ;;  %v2083_v30 = vld [vmem:[%s2705_s11 + $0x10] sm:$0xff]   ;;  %v2085_v32 = vld [vmem:[%s2705_s11 + $0x58] sm:$0xff]  }
 0x1f9   : > { %v2086_v33 = vld [vmem:[%s2705_s11 + $0x18] sm:$0xff]   ;;  %v2088_v35 = vld [vmem:[%s2705_s11 + $0x60] sm:$0xff]   ;;  %v2091_v37 = vld [vmem:[%s2705_s11 + $0x68] sm:$0xff]  }
 0x1fa   : > { %v662_v46 = vadd.f32 %v661_v39, %v655_v38  ;;  %v2087_v34 = vld [vmem:[%s2705_s11 + $0x98] sm:$0xff]   ;;  %v2090_v38 = vld [vmem:[%s2705_s11 + $0xa0] sm:$0xff]   ;;  %v2092_v39 = vld [vmem:[%s2705_s11 + $0x28] sm:$0xff]  }
 0x1fb   : > { %v2097_v43 = vld [vmem:[%s2705_s11 + $0x78] sm:$0xff]   ;;  %v2096_v44 = vld [vmem:[%s2705_s11 + $0xb0] sm:$0xff]  }
 0x1fc   : > { %v663_v52 = vadd.f32 %v662_v46, %v656_v45  ;;  %v2098_v45 = vld [vmem:[%s2705_s11 + $0x38] sm:$0xff]  }
 0x1fd   : > { %v2099_v46 = vld [vmem:[%s2705_s11 + $0xb8] sm:$0xff]  }
 0x1fe   : > { %v664_v55 = vadd.f32 %v663_v52, %v657_v51  ;;  %v735_v52 = vlaneseq }
 0x200   : > { %v665_v58 = vadd.f32 %v664_v55, %v658_v54  ;;  %v736_v53 = vshrl.u32 %v735_v52, 7  ;;  %v733_v55 = vld [vmem:[%s2703_s9] sm:$0x7] }
 0x202   : > { %v666_v59 = vadd.f32 %v665_v58, %v659_v57  ;;  %v737_v54 = vsub.s32 0, %v736_v53  ;;  %v741_v56 = vsub.s32 1, %v736_v53 }
 0x204   : > { %v2511_v61 = vpack.c.bf16 %v666_v59, %v666_v59  ;;  %v738_v57 = vrot.slane %v733_v55, %v737_v54  ;;  %v742_v59 = vrot.slane %v733_v55, %v741_v56 }
 0x206   : > { %1038 = vmatprep.mubr.bf16.mxu1 %v2511_v61  ;;  %1079 = vmatprep.mubr.bf16.mxu0 %v2511_v61 }
 0x207   : > { %1039 = vmatmul.mubr.bf16.vlgmr.msra.gmra.mrb[0].mxu1 %v2509_v60  ;;  %1080 = vmatmul.mubr.bf16.vlgmr.msra.gmra.mrb[4].mxu0 %v2509_v60 }
 0x208   : > { %1265 = vmatpush1.bf16.msra.mxu1 %v2044_v62  ;;  %1912 = vmatpush3.bf16.msra.mxu0 %v2047_v63 }
 0x209   : > { %1266 = vmatprep.subr.bf16.mxu1 %v2050_v0  ;;  %1913 = vmatprep.subr.bf16.mxu0 %v2169_v3 }
 0x20a   : > { %1296 = vmatprep.mubr.bf16.mxu1 %v2171_v5  ;;  %1927 = vmatprep.mubr.msk.bf16.mxu0 %vm2170_vm0, %v2169_v3 }
 0x20c   : > { %1267 = vmatpush1.bf16.msra.mxu1 %v2048_v1  ;;  %1914 = vmatpush3.bf16.msra.mxu0 %v2051_v2 }
 0x20d   : > { %1268 = vmatprep.subr.bf16.mxu1 %v2054_v4  ;;  %1915 = vmatprep.subr.bf16.mxu0 %v2169_v3 }
 0x210   : > { %1269 = vmatpush1.bf16.msra.mxu1 %v2052_v6  ;;  %1916 = vmatpush3.bf16.msra.mxu0 %v2055_v7 }
 0x211   : > { %1270 = vmatprep.subr.bf16.mxu1 %v2058_v8  ;;  %1917 = vmatprep.subr.bf16.mxu0 %v2169_v3 }
 0x214   : > { %1271 = vmatpush1.bf16.msra.mxu1 %v2056_v9  ;;  %1918 = vmatpush3.bf16.msra.mxu0 %v2059_v10 }
 0x215   : > { %1272 = vmatprep.subr.bf16.mxu1 %v2062_v11  ;;  %1919 = vmatprep.subr.bf16.mxu0 %v2169_v3 }
 0x218   : > { %1273 = vmatpush1.bf16.msra.mxu1 %v2060_v13  ;;  %1920 = vmatpush3.bf16.msra.mxu0 %v2063_v14 }
 0x219   : > { %1274 = vmatprep.subr.bf16.mxu1 %v2066_v15  ;;  %1921 = vmatprep.subr.bf16.mxu0 %v2169_v3  ;;  %v745_v15 = vsub.s32 2, %v736_v53 }
 0x21c   : > { %1275 = vmatpush1.bf16.msra.mxu1 %v2064_v16  ;;  %1922 = vmatpush3.bf16.msra.mxu0 %v2067_v17 }
 0x21d   : > { %1276 = vmatprep.subr.bf16.mxu1 %v2070_v18  ;;  %1923 = vmatprep.subr.bf16.mxu0 %v2169_v3  ;;  %v746_v18 = vrot.slane %v733_v55, %v745_v15 }
 0x220   : > { %1277 = vmatpush1.bf16.msra.mxu1 %v2068_v19  ;;  %1924 = vmatpush3.bf16.msra.mxu0 %v2071_v20 }
 0x221   : > { %1278 = vmatprep.subr.bf16.mxu1 %v2074_v21  ;;  %1925 = vmatprep.subr.bf16.mxu0 %v2169_v3 }
 0x224   : > { %1279 = vmatpush1.bf16.msra.mxu1 %v2072_v22  ;;  %1926 = vmatpush3.bf16.msra.mxu0 %v2075_v23 }
 0x225   : > { %1931 = vmatprep.subr.bf16.mxu1 %v2169_v3  ;;  %1860 = vmatprep.subr.bf16.mxu0 %v2076_v24 }
 0x227   : > { %1297 = vmatmul.mubr.bf16.vlgmr.msra.gmra.mrb[0].mxu1 %v2305_v12  ;;  %1928 = vmatmul.mubr.bf16.vlgmr.msra.gmra.mrb[8].mxu0 %v2305_v12  ;;  %v2079_v12 = vld [vmem:[%s2705_s11 + $0x48] sm:$0xff]  }
 0x228   : > { %1598 = vmatprep.mubr.bf16.mxu0 %v2511_v61  ;;  %1947 = vmatprep.mubr.msk.bf16.mxu1 %vm2170_vm0, %v2169_v3 }
 0x229   : > { %1932 = vmatpush3.bf16.msra.mxu1 %v2078_v26  ;;  %1861 = vmatpush3.bf16.msra.mxu0 %v2077_v25 }
 0x22a   : > { %1933 = vmatprep.subr.bf16.mxu1 %v2169_v3  ;;  %1862 = vmatprep.subr.bf16.mxu0 %v2079_v12 }
 0x22d   : > { %1863 = vmatpush3.bf16.msra.mxu0 %v2080_v27  ;;  %1934 = vmatpush3.bf16.msra.mxu1 %v2081_v28  ;;  %v2144_v28 = vld [vmem:[#allocation2] sm:$0xff] }
 0x22e   : > { %1864 = vmatprep.subr.bf16.mxu0 %v2082_v29  ;;  %1935 = vmatprep.subr.bf16.mxu1 %v2169_v3 }
 0x231   : > { %1865 = vmatpush3.bf16.msra.mxu0 %v2083_v30  ;;  %1936 = vmatpush3.bf16.msra.mxu1 %v2084_v31 }
 0x232   : > { %1866 = vmatprep.subr.bf16.mxu0 %v2085_v32  ;;  %1937 = vmatprep.subr.bf16.mxu1 %v2169_v3 }
 0x235   : > { %1867 = vmatpush3.bf16.msra.mxu0 %v2086_v33  ;;  %1938 = vmatpush3.bf16.msra.mxu1 %v2087_v34 }
 0x236   : > { %1868 = vmatprep.subr.bf16.mxu0 %v2088_v35  ;;  %1939 = vmatprep.subr.bf16.mxu1 %v2169_v3 }
 0x239   : > { %1869 = vmatpush3.bf16.msra.mxu0 %v2089_v36  ;;  %1940 = vmatpush3.bf16.msra.mxu1 %v2090_v38  ;;  %v1793_v38 = vld [vmem:[%s2706_s12] ss:$0 sm:$0xff] }
 0x23a   : > { %1870 = vmatprep.subr.bf16.mxu0 %v2091_v37  ;;  %1941 = vmatprep.subr.bf16.mxu1 %v2169_v3 }
 0x23d   : > { %1871 = vmatpush3.bf16.msra.mxu0 %v2092_v39  ;;  %1942 = vmatpush3.bf16.msra.mxu1 %v2093_v41 }
 0x23e   : > { %1872 = vmatprep.subr.bf16.mxu0 %v2094_v40  ;;  %1943 = vmatprep.subr.bf16.mxu1 %v2169_v3 }
 0x241   : > { %1873 = vmatpush3.bf16.msra.mxu0 %v2095_v42  ;;  %1944 = vmatpush3.bf16.msra.mxu1 %v2096_v44 }
 0x242   : > { %1874 = vmatprep.subr.bf16.mxu0 %v2097_v43  ;;  %1945 = vmatprep.subr.bf16.mxu1 %v2169_v3  ;;  %v1119_v3 = vld [vmem:[%s2704_s10] sm:$0x7] }
 0x243   : > { %v1124_v58 = vrot.slane %v1119_v3, %v737_v54  ;;  %v1132_v16 = vrot.slane %v1119_v3, %v745_v15 }
 0x245   : > { %1875 = vmatpush3.bf16.msra.mxu0 %v2098_v45  ;;  %1946 = vmatpush3.bf16.msra.mxu1 %v2099_v46  ;;  %v1951_v61 = vadd.f32 %v1124_v58, %v738_v57 }
 0x248   : > { %1948 = vmatmul.mubr.bf16.vlgmr.msra.gmra.mrb[4].mxu1 %v2509_v60  ;;  %v1128_v60 = vrot.slane %v1119_v3, %v741_v56 }
 0x24a   : > { %v1953_v63 = vadd.f32 %v1128_v60, %v742_v59 }
 0x2da   : > { %v1845_v47 = vpop.f32.mrb[4].mxu0 }
 0x2db   : > { %v1846_v48 = vpop.f32.mrb[5].mxu0 }
 0x2dc   : > { %v1847_v49 = vadd.f32 %v1846_v48, %v1845_v47  ;;  %v1848_v50 = vpop.f32.mrb[6].mxu0 }
 0x2dd   : > { %v1849_v51 = vpop.f32.mrb[7].mxu0 }
 0x2de   : > { %v1082_v22 = vadd.f32 %v1847_v49, %v746_v18 }
 0x2fa   : > { %v1298_v62 = vpop.f32.mrb[0].mxu1  ;;  %v1339_v0 = vpop.f32.mrb[8].mxu0 }
 0x2fb   : > { %v1952_v1 = vadd.f32 %v1951_v61, %v1298_v62  ;;  %v1300_v2 = vpop.f32.mrb[1].mxu1  ;;  %v1929_v4 = vpop.f32.mrb[9].mxu0  ;;  %v1340_v20 = vadd.f32 %v1339_v0, %v1132_v16 }
 0x2fc   : > { %v1302_v5 = vpop.f32.mrb[2].mxu1  ;;  %v1342_v6 = vpop.f32.mrb[10].mxu0  ;;  %v1954_v10 = vadd.f32 %v1953_v63, %v1300_v2 }
 0x2fd   : > { %v1791_v7 = vmul.f32 -1.442695, %v1952_v1  ;;  %v1303_v8 = vpop.f32.mrb[3].mxu1  ;;  %v1930_v9 = vpop.f32.mrb[11].mxu0 }
 0x2fe   : > { %v1792_v11 = vmul.f32 -1.442695, %v1954_v10 }
 0x2ff   : > { %2134 = vpow2.f32 %v1791_v7 }
 0x300   : > { %2136 = vpow2.f32 %v1792_v11 }
 0x309   : > { %v2135_v13 = vpop.eup %2134 }
 0x30a   : > { %v1349_v14 = vadd.f32 1.0, %v2135_v13  ;;  %v2137_v17 = vpop.eup %2136 }
 0x30b   : > { %v1356_v19 = vadd.f32 1.0, %v2137_v17 }
 0x30c   : > { %2138 = vrcp.f32 %v1349_v14 }
 0x30d   : > { %2140 = vrcp.f32 %v1356_v19 }
 0x316   : > { %v2139_v21 = vpop.eup %2138 }
 0x317   : > { %v1359_v23 = vmul.f32 %v2139_v21, %v1340_v20  ;;  %v2141_v25 = vpop.eup %2140 }
 0x318   : > { %v1362_v26 = vsub.f32 1.0, %v2141_v25  ;;  %v1364_v29 = vmul.f32 %v2144_v28, %v2141_v25 }
 0x319   : > { %v1360_v24 = vadd.f32 %v1359_v23, %v1082_v22 }
 0x31b   : > { %2142 = vtanh.f32 %v1360_v24  ;;  %v1640_v32 = vpop.f32.mrb[4].mxu1 }
 0x31c   : > { %v1949_v33 = vpop.f32.mrb[5].mxu1 }
 0x31d   : > { %v1643_v34 = vpop.f32.mrb[6].mxu1 }
 0x31e   : > { %v1950_v35 = vpop.f32.mrb[7].mxu1 }
 0x325   : > { %v2143_v12 = vpop.eup %2142 }
 0x326   : > { %v1363_v27 = vmul.f32 %v2143_v12, %v1362_v26 }
 0x328   : > { %v1365_v30 = vadd.f32 %v1364_v29, %v1363_v27 }
 0x32a   : > { %v1366_v31 = vpack.c.bf16 %v1365_v30, %v1365_v30  ;;  %1647 = vst [vmem:[#allocation2] sm:$0xff] %v1365_v30 }
 0x32c   : > { %1599 = vmatmul.mubr.bf16.vlgmr.msra.gmra.mrb[12].mxu0 %v1366_v31 }
 0x3ff   : > { %v1876_v36 = vpop.f32.mrb[12].mxu0 }
 0x400   : > { %v1877_v37 = vpop.f32.mrb[13].mxu0 }
 0x401   : > { %v1878_v39 = vadd.f32 %v1877_v37, %v1876_v36  ;;  %v1879_v40 = vpop.f32.mrb[14].mxu0 }
 0x402   : > { %v1880_v41 = vpop.f32.mrb[15].mxu0 }
 0x403   : > { %v1601_v42 = vadd.f32 %v1878_v39, %v1793_v38 }
 0x405   : > { %v1641_v43 = vadd.f32 %v1640_v32, %v1601_v42 }
 0x407   : > { %1646 = vst [vmem:[%s2265_s21] sm:$0xff] %v1641_v43  ;;  %1648 = vst [vmem:[#allocation3] sm:$0xff] %v1641_v43 }
 0x408 PF: > { %s29_s30 = sadd.s32 1, %s2165_s30  }
 0x409   : > { %p26_p11 = scmp.ge.s32.totalorder %s29_s30, 7  }
 0x40b   :  { %28 = sbr.rel (!%p26_p11) target bundleno = 16 (0x10), region = 102 }

</bundles_post_ra>
